<compile_context>
chip_gen: v5e
topology: v5e:2x2
jax: 0.10.0
libtpu: 0.0.40
codegen_flags: <defaults>
</compile_context>

<pallas_src>
import functools

import jax
import jax.numpy as jnp
from jax.experimental import pallas as pl
from jax.experimental.pallas import tpu as pltpu


# ----------------------------------------------------------------------------
# Pallas kernel: single-pass matmul with fused bias-add and optional ReLU.
#   A: (tm, K) bf16   B: (K, N) bf16   bias: (1, N) f32   ->   O: (tm, N) f32
# The full K reduction fits one MXU pass, so there is no K grid axis, no
# accumulator scratch and no init/finalize control flow.
# ----------------------------------------------------------------------------
def _matmul_bias_act_kernel(a_ref, b_ref, bias_ref, o_ref, *, act):
    acc = jnp.dot(a_ref[...], b_ref[...], preferred_element_type=jnp.float32)
    r = acc + bias_ref[...]                 # f32 epilogue
    if act == "relu":
        r = jnp.maximum(r, 0.0)
    o_ref[...] = r.astype(o_ref.dtype)


def matmul_bias_act(a, b_bf16, bias_f32, act=None, tm=128):
    """GEMM (M,K)@(K,N) + bias (+ReLU).  bf16 operands, f32 accumulate.

    K and N blocks equal the full array dims (no host zero-padding); only M
    is tiled (tm) and padded when needed.  Grid = (M tiles,), marked parallel.
    """
    M, K = a.shape
    K2, N = b_bf16.shape
    assert K == K2 and bias_f32.shape == (1, N)

    a = a.astype(jnp.bfloat16)
    if M <= tm:
        tm_eff, Mp = M, M                       # one full-M block
    else:
        tm_eff = tm
        Mp = pl.cdiv(M, tm) * tm
        if Mp != M:
            a = jnp.pad(a, ((0, Mp - M), (0, 0)))

    out = pl.pallas_call(
        functools.partial(_matmul_bias_act_kernel, act=act),
        out_shape=jax.ShapeDtypeStruct((Mp, N), jnp.float32),
        grid_spec=pltpu.PrefetchScalarGridSpec(
            num_scalar_prefetch=0,
            grid=(Mp // tm_eff,),
            in_specs=[
                pl.BlockSpec((tm_eff, K), lambda i: (i, 0)),
                pl.BlockSpec((K, N), lambda i: (0, 0)),
                pl.BlockSpec((1, N), lambda i: (0, 0)),
            ],
            out_specs=pl.BlockSpec((tm_eff, N), lambda i: (i, 0)),
        ),
        compiler_params=pltpu.CompilerParams(
            dimension_semantics=("parallel",),
        ),
    )(a, b_bf16, bias_f32)
    return out[:M] if Mp != M else out


# ----------------------------------------------------------------------------
# Conv2d via im2col (XLA glue) + Pallas GEMM (hot path).
# x: NHWC float32, wm: (kh*kw*Cin, Cout) bf16 (precomputed), b: (1, Cout) f32
# ----------------------------------------------------------------------------
def _im2col(x_nhwc, kh, kw, stride, padding):
    N, H, W, C = x_nhwc.shape
    xp = jnp.pad(x_nhwc, ((0, 0), (padding, padding), (padding, padding), (0, 0)))
    Ho = (H + 2 * padding - kh) // stride + 1
    Wo = (W + 2 * padding - kw) // stride + 1
    patches = []
    for i in range(kh):
        for j in range(kw):
            patches.append(
                xp[:, i: i + stride * Ho: stride, j: j + stride * Wo: stride, :]
            )
    col = jnp.concatenate(patches, axis=-1)          # (N, Ho, Wo, kh*kw*C)
    return col.reshape(N * Ho * Wo, kh * kw * C), (N, Ho, Wo)


def conv2d(x_nhwc, wm, b, k, stride=1, padding=0, act=None):
    if k == 1 and stride == 1 and padding == 0:
        N, H, W, C = x_nhwc.shape                    # 1x1 conv: no im2col
        out = matmul_bias_act(x_nhwc.reshape(N * H * W, C), wm, b, act=act)
        return out.reshape(N, H, W, -1)
    a, (N, Ho, Wo) = _im2col(x_nhwc, k, k, stride, padding)
    out = matmul_bias_act(a, wm, b, act=act)
    return out.reshape(N, Ho, Wo, -1)


def conv3x3_shared(feats, wm, b, act=None):
    """One shared 3x3 conv (stride 1, pad 1) applied to several pyramid levels
    with a single fused GEMM: im2col rows of all levels concatenated on M."""
    cols, shapes = [], []
    for f in feats:
        col, shp = _im2col(f, 3, 3, 1, 1)
        cols.append(col)
        shapes.append(shp)
    out = matmul_bias_act(jnp.concatenate(cols, axis=0), wm, b, act=act)
    res, off = [], 0
    for (N, Ho, Wo) in shapes:
        m = N * Ho * Wo
        res.append(out[off: off + m].reshape(N, Ho, Wo, -1))
        off += m
    return res


def upsample2x(x_nhwc):
    x = jnp.repeat(x_nhwc, 2, axis=1)
    return jnp.repeat(x, 2, axis=2)


# ----------------------------------------------------------------------------
# Deterministic parameter init (synthetic -- no checkpoint loading).
# GEMM-ready (transposed/reshaped, bf16) weights are built once here.
# ----------------------------------------------------------------------------
def _init_conv(key, cout, cin, k):
    kw_, kb_ = jax.random.split(key)
    w = jax.random.normal(kw_, (cout, cin, k, k), jnp.float32) * 0.05
    b = jax.random.normal(kb_, (cout,), jnp.float32) * 0.01
    # (Cout, Cin, kh, kw) -> (kh*kw*Cin, Cout), matching im2col tap order (i, j, cin)
    wm = jnp.transpose(w, (2, 3, 1, 0)).reshape(k * k * cin, cout)
    return wm.astype(jnp.bfloat16), b.reshape(1, cout).astype(jnp.float32)


def init_params(seed=0, num_classes=4, reg_max=7, fpn_ch=16):
    key = jax.random.PRNGKey(seed)
    keys = jax.random.split(key, 16)
    p = {}
    # backbone
    p["bb1"] = _init_conv(keys[0], 8, 3, 3)
    p["bb2"] = _init_conv(keys[1], 16, 8, 3)
    p["bb3"] = _init_conv(keys[2], 32, 16, 3)
    # fpn laterals (1x1)
    p["lat1"] = _init_conv(keys[3], fpn_ch, 8, 1)
    p["lat2"] = _init_conv(keys[4], fpn_ch, 16, 1)
    p["lat3"] = _init_conv(keys[5], fpn_ch, 32, 1)
    # head (shared across levels)
    p["head1"] = _init_conv(keys[6], fpn_ch, fpn_ch, 3)
    p["head2"] = _init_conv(keys[7], fpn_ch, fpn_ch, 3)
    out_ch = num_classes + 4 * (reg_max + 1)
    p["gfl"] = _init_conv(keys[8], out_ch, fpn_ch, 3)
    return p


# ----------------------------------------------------------------------------
# GFL forward:  x -> backbone -> fpn -> head   (input/outputs NCHW)
# ----------------------------------------------------------------------------
def gfl_forward(x_nchw, params):
    x = jnp.transpose(x_nchw, (0, 2, 3, 1)).astype(jnp.float32)  # NCHW -> NHWC

    # backbone
    c1 = conv2d(x, *params["bb1"], k=3, stride=2, padding=1, act="relu")   # H/2,  8ch
    c2 = conv2d(c1, *params["bb2"], k=3, stride=2, padding=1, act="relu")  # H/4, 16ch
    c3 = conv2d(c2, *params["bb3"], k=3, stride=2, padding=1, act="relu")  # H/8, 32ch

    # fpn (1x1 laterals + nearest 2x top-down adds)
    p3 = conv2d(c3, *params["lat3"], k=1)
    p2 = conv2d(c2, *params["lat2"], k=1) + upsample2x(p3)
    p1 = conv2d(c1, *params["lat1"], k=1) + upsample2x(p2)

    # head: shared weights -> one fused GEMM per conv across all three levels
    feats = [p1, p2, p3]
    feats = conv3x3_shared(feats, *params["head1"], act="relu")
    feats = conv3x3_shared(feats, *params["head2"], act="relu")
    outs = conv3x3_shared(feats, *params["gfl"], act=None)

    return tuple(jnp.transpose(o, (0, 3, 1, 2)) for o in outs)  # back to NCHW


if __name__ == "__main__":
    key = jax.random.PRNGKey(0)
    x = jax.random.normal(key, (2, 3, 32, 32), jnp.float32)  # NCHW image batch
    params = init_params(seed=0)

    fwd = jax.jit(gfl_forward)
    outs = fwd(x, params)
    outs = jax.block_until_ready(outs)

    expected = [(2, 36, 16, 16), (2, 36, 8, 8), (2, 36, 4, 4)]
    assert [tuple(o.shape) for o in outs] == expected, [o.shape for o in outs]
    assert all(bool(jnp.all(jnp.isfinite(o))) for o in outs)
    print("KERNEL_OK")
</pallas_src>

<mosaic_0001>
module attributes {stable_mosaic.version = 11 : i64} {
  func.func @_matmul_bias_act_kernel(%arg0: i32, %arg1: memref<128x27xbf16, #tpu.memory_space<vmem>>, %arg2: memref<27x8xbf16, #tpu.memory_space<vmem>>, %arg3: memref<1x8xf32, #tpu.memory_space<vmem>>, %arg4: memref<128x8xf32, #tpu.memory_space<vmem>>) attributes {dimension_semantics = [#tpu.dimension_semantics<parallel>], iteration_bounds = array<i64: 4>, scalar_prefetch = 0 : i64, scratch_operands = 0 : i64, tpu.core_type = #tpu.core_type<tc>, window_params = [{transform_indices = @transform_0, window_bounds = array<i64: 128, 27>}, {pipeline_mode = #tpu.pipeline_mode<synchronous>, transform_indices = @transform_1, window_bounds = array<i64: 27, 8>}, {pipeline_mode = #tpu.pipeline_mode<synchronous>, transform_indices = @transform_2, window_bounds = array<i64: 1, 8>}, {transform_indices = @transform_3, window_bounds = array<i64: 128, 8>}]} {
    %c0 = arith.constant 0 : index
    %c0_0 = arith.constant 0 : index
    %0 = vector.load %arg1[%c0, %c0_0] : memref<128x27xbf16, #tpu.memory_space<vmem>>, vector<128x27xbf16>
    %c0_1 = arith.constant 0 : index
    %c0_2 = arith.constant 0 : index
    %1 = vector.load %arg2[%c0_1, %c0_2] : memref<27x8xbf16, #tpu.memory_space<vmem>>, vector<27x8xbf16>
    %cst = arith.constant dense<0.000000e+00> : vector<128x8xf32>
    %2 = tpu.matmul %0, %1, %cst {dimension_numbers = #tpu.dot_dimension_numbers<[1], [0], [0], [1], [0, 0, 1, 1], [], []>} : vector<128x27xbf16>, vector<27x8xbf16>, vector<128x8xf32> -> vector<128x8xf32>
    %c0_3 = arith.constant 0 : index
    %c0_4 = arith.constant 0 : index
    %3 = vector.load %arg3[%c0_3, %c0_4] : memref<1x8xf32, #tpu.memory_space<vmem>>, vector<1x8xf32>
    %4 = vector.broadcast %3 : vector<1x8xf32> to vector<128x8xf32>
    %5 = arith.addf %2, %4 : vector<128x8xf32>
    %cst_5 = arith.constant 0.000000e+00 : f32
    %6 = vector.broadcast %cst_5 : f32 to vector<128x8xf32>
    %7 = arith.maximumf %5, %6 : vector<128x8xf32>
    %c0_6 = arith.constant 0 : index
    %c0_7 = arith.constant 0 : index
    %8 = vector.load %arg4[%c0_6, %c0_7] : memref<128x8xf32, #tpu.memory_space<vmem>>, vector<128x8xf32>
    tpu.vector_store %arg4[%c0_6, %c0_7], %7 {strides = array<i32>} : memref<128x8xf32, #tpu.memory_space<vmem>>, vector<128x8xf32>,
    return
  }
  func.func @transform_0(%arg0: i32) -> (i32, i32) {
    %c0_i32 = arith.constant 0 : i32
    %c0_i32_0 = arith.constant 0 : i32
    return %arg0, %c0_i32 : i32, i32
  }
  func.func @transform_1(%arg0: i32) -> (i32, i32) {
    %c0_i32 = arith.constant 0 : i32
    %c0_i32_0 = arith.constant 0 : i32
    %c0_i32_1 = arith.constant 0 : i32
    return %c0_i32, %c0_i32_0 : i32, i32
  }
  func.func @transform_2(%arg0: i32) -> (i32, i32) {
    %c0_i32 = arith.constant 0 : i32
    %c0_i32_0 = arith.constant 0 : i32
    %c0_i32_1 = arith.constant 0 : i32
    return %c0_i32, %c0_i32_0 : i32, i32
  }
  func.func @transform_3(%arg0: i32) -> (i32, i32) {
    %c0_i32 = arith.constant 0 : i32
    %c0_i32_0 = arith.constant 0 : i32
    return %arg0, %c0_i32 : i32, i32
  }
}

module attributes {stable_mosaic.version = 11 : i64} {
  func.func @_matmul_bias_act_kernel(%arg0: i32, %arg1: memref<128x72xbf16, #tpu.memory_space<vmem>>, %arg2: memref<72x16xbf16, #tpu.memory_space<vmem>>, %arg3: memref<1x16xf32, #tpu.memory_space<vmem>>, %arg4: memref<128x16xf32, #tpu.memory_space<vmem>>) attributes {dimension_semantics = [#tpu.dimension_semantics<parallel>], iteration_bounds = array<i64: 1>, scalar_prefetch = 0 : i64, scratch_operands = 0 : i64, tpu.core_type = #tpu.core_type<tc>, window_params = [{transform_indices = @transform_0, window_bounds = array<i64: 128, 72>}, {pipeline_mode = #tpu.pipeline_mode<synchronous>, transform_indices = @transform_1, window_bounds = array<i64: 72, 16>}, {pipeline_mode = #tpu.pipeline_mode<synchronous>, transform_indices = @transform_2, window_bounds = array<i64: 1, 16>}, {transform_indices = @transform_3, window_bounds = array<i64: 128, 16>}]} {
    %c0 = arith.constant 0 : index
    %c0_0 = arith.constant 0 : index
    %0 = vector.load %arg1[%c0, %c0_0] : memref<128x72xbf16, #tpu.memory_space<vmem>>, vector<128x72xbf16>
    %c0_1 = arith.constant 0 : index
    %c0_2 = arith.constant 0 : index
    %1 = vector.load %arg2[%c0_1, %c0_2] : memref<72x16xbf16, #tpu.memory_space<vmem>>, vector<72x16xbf16>
    %cst = arith.constant dense<0.000000e+00> : vector<128x16xf32>
    %2 = tpu.matmul %0, %1, %cst {dimension_numbers = #tpu.dot_dimension_numbers<[1], [0], [0], [1], [0, 0, 1, 1], [], []>} : vector<128x72xbf16>, vector<72x16xbf16>, vector<128x16xf32> -> vector<128x16xf32>
    %c0_3 = arith.constant 0 : index
    %c0_4 = arith.constant 0 : index
    %3 = vector.load %arg3[%c0_3, %c0_4] : memref<1x16xf32, #tpu.memory_space<vmem>>, vector<1x16xf32>
    %4 = vector.broadcast %3 : vector<1x16xf32> to vector<128x16xf32>
    %5 = arith.addf %2, %4 : vector<128x16xf32>
    %cst_5 = arith.constant 0.000000e+00 : f32
    %6 = vector.broadcast %cst_5 : f32 to vector<128x16xf32>
    %7 = arith.maximumf %5, %6 : vector<128x16xf32>
    %c0_6 = arith.constant 0 : index
    %c0_7 = arith.constant 0 : index
    %8 = vector.load %arg4[%c0_6, %c0_7] : memref<128x16xf32, #tpu.memory_space<vmem>>, vector<128x16xf32>
    tpu.vector_store %arg4[%c0_6, %c0_7], %7 {strides = array<i32>} : memref<128x16xf32, #tpu.memory_space<vmem>>, vector<128x16xf32>,
    return
  }
  func.func @transform_0(%arg0: i32) -> (i32, i32) {
    %c0_i32 = arith.constant 0 : i32
    %c0_i32_0 = arith.constant 0 : i32
    return %arg0, %c0_i32 : i32, i32
  }
  func.func @transform_1(%arg0: i32) -> (i32, i32) {
    %c0_i32 = arith.constant 0 : i32
    %c0_i32_0 = arith.constant 0 : i32
    %c0_i32_1 = arith.constant 0 : i32
    return %c0_i32, %c0_i32_0 : i32, i32
  }
  func.func @transform_2(%arg0: i32) -> (i32, i32) {
    %c0_i32 = arith.constant 0 : i32
    %c0_i32_0 = arith.constant 0 : i32
    %c0_i32_1 = arith.constant 0 : i32
    return %c0_i32, %c0_i32_0 : i32, i32
  }
  func.func @transform_3(%arg0: i32) -> (i32, i32) {
    %c0_i32 = arith.constant 0 : i32
    %c0_i32_0 = arith.constant 0 : i32
    return %arg0, %c0_i32 : i32, i32
  }
}

module attributes {stable_mosaic.version = 11 : i64} {
  func.func @_matmul_bias_act_kernel(%arg0: i32, %arg1: memref<32x144xbf16, #tpu.memory_space<vmem>>, %arg2: memref<144x32xbf16, #tpu.memory_space<vmem>>, %arg3: memref<1x32xf32, #tpu.memory_space<vmem>>, %arg4: memref<32x32xf32, #tpu.memory_space<vmem>>) attributes {dimension_semantics = [#tpu.dimension_semantics<parallel>], iteration_bounds = array<i64: 1>, scalar_prefetch = 0 : i64, scratch_operands = 0 : i64, tpu.core_type = #tpu.core_type<tc>, window_params = [{transform_indices = @transform_0, window_bounds = array<i64: 32, 144>}, {pipeline_mode = #tpu.pipeline_mode<synchronous>, transform_indices = @transform_1, window_bounds = array<i64: 144, 32>}, {pipeline_mode = #tpu.pipeline_mode<synchronous>, transform_indices = @transform_2, window_bounds = array<i64: 1, 32>}, {transform_indices = @transform_3, window_bounds = array<i64: 32, 32>}]} {
    %c0 = arith.constant 0 : index
    %c0_0 = arith.constant 0 : index
    %0 = vector.load %arg1[%c0, %c0_0] : memref<32x144xbf16, #tpu.memory_space<vmem>>, vector<32x144xbf16>
    %c0_1 = arith.constant 0 : index
    %c0_2 = arith.constant 0 : index
    %1 = vector.load %arg2[%c0_1, %c0_2] : memref<144x32xbf16, #tpu.memory_space<vmem>>, vector<144x32xbf16>
    %cst = arith.constant dense<0.000000e+00> : vector<32x32xf32>
    %2 = tpu.matmul %0, %1, %cst {dimension_numbers = #tpu.dot_dimension_numbers<[1], [0], [0], [1], [0, 0, 1, 1], [], []>} : vector<32x144xbf16>, vector<144x32xbf16>, vector<32x32xf32> -> vector<32x32xf32>
    %c0_3 = arith.constant 0 : index
    %c0_4 = arith.constant 0 : index
    %3 = vector.load %arg3[%c0_3, %c0_4] : memref<1x32xf32, #tpu.memory_space<vmem>>, vector<1x32xf32>
    %4 = vector.broadcast %3 : vector<1x32xf32> to vector<32x32xf32>
    %5 = arith.addf %2, %4 : vector<32x32xf32>
    %cst_5 = arith.constant 0.000000e+00 : f32
    %6 = vector.broadcast %cst_5 : f32 to vector<32x32xf32>
    %7 = arith.maximumf %5, %6 : vector<32x32xf32>
    %c0_6 = arith.constant 0 : index
    %c0_7 = arith.constant 0 : index
    %8 = vector.load %arg4[%c0_6, %c0_7] : memref<32x32xf32, #tpu.memory_space<vmem>>, vector<32x32xf32>
    tpu.vector_store %arg4[%c0_6, %c0_7], %7 {strides = array<i32>} : memref<32x32xf32, #tpu.memory_space<vmem>>, vector<32x32xf32>,
    return
  }
  func.func @transform_0(%arg0: i32) -> (i32, i32) {
    %c0_i32 = arith.constant 0 : i32
    %c0_i32_0 = arith.constant 0 : i32
    return %arg0, %c0_i32 : i32, i32
  }
  func.func @transform_1(%arg0: i32) -> (i32, i32) {
    %c0_i32 = arith.constant 0 : i32
    %c0_i32_0 = arith.constant 0 : i32
    %c0_i32_1 = arith.constant 0 : i32
    return %c0_i32, %c0_i32_0 : i32, i32
  }
  func.func @transform_2(%arg0: i32) -> (i32, i32) {
    %c0_i32 = arith.constant 0 : i32
    %c0_i32_0 = arith.constant 0 : i32
    %c0_i32_1 = arith.constant 0 : i32
    return %c0_i32, %c0_i32_0 : i32, i32
  }
  func.func @transform_3(%arg0: i32) -> (i32, i32) {
    %c0_i32 = arith.constant 0 : i32
    %c0_i32_0 = arith.constant 0 : i32
    return %arg0, %c0_i32 : i32, i32
  }
}

module attributes {stable_mosaic.version = 11 : i64} {
  func.func @_matmul_bias_act_kernel(%arg0: i32, %arg1: memref<32x32xbf16, #tpu.memory_space<vmem>>, %arg2: memref<32x16xbf16, #tpu.memory_space<vmem>>, %arg3: memref<1x16xf32, #tpu.memory_space<vmem>>, %arg4: memref<32x16xf32, #tpu.memory_space<vmem>>) attributes {dimension_semantics = [#tpu.dimension_semantics<parallel>], iteration_bounds = array<i64: 1>, scalar_prefetch = 0 : i64, scratch_operands = 0 : i64, tpu.core_type = #tpu.core_type<tc>, window_params = [{transform_indices = @transform_0, window_bounds = array<i64: 32, 32>}, {pipeline_mode = #tpu.pipeline_mode<synchronous>, transform_indices = @transform_1, window_bounds = array<i64: 32, 16>}, {pipeline_mode = #tpu.pipeline_mode<synchronous>, transform_indices = @transform_2, window_bounds = array<i64: 1, 16>}, {transform_indices = @transform_3, window_bounds = array<i64: 32, 16>}]} {
    %c0 = arith.constant 0 : index
    %c0_0 = arith.constant 0 : index
    %0 = vector.load %arg1[%c0, %c0_0] : memref<32x32xbf16, #tpu.memory_space<vmem>>, vector<32x32xbf16>
    %c0_1 = arith.constant 0 : index
    %c0_2 = arith.constant 0 : index
    %1 = vector.load %arg2[%c0_1, %c0_2] : memref<32x16xbf16, #tpu.memory_space<vmem>>, vector<32x16xbf16>
    %cst = arith.constant dense<0.000000e+00> : vector<32x16xf32>
    %2 = tpu.matmul %0, %1, %cst {dimension_numbers = #tpu.dot_dimension_numbers<[1], [0], [0], [1], [0, 0, 1, 1], [], []>} : vector<32x32xbf16>, vector<32x16xbf16>, vector<32x16xf32> -> vector<32x16xf32>
    %c0_3 = arith.constant 0 : index
    %c0_4 = arith.constant 0 : index
    %3 = vector.load %arg3[%c0_3, %c0_4] : memref<1x16xf32, #tpu.memory_space<vmem>>, vector<1x16xf32>
    %4 = vector.broadcast %3 : vector<1x16xf32> to vector<32x16xf32>
    %5 = arith.addf %2, %4 : vector<32x16xf32>
    %c0_5 = arith.constant 0 : index
    %c0_6 = arith.constant 0 : index
    %6 = vector.load %arg4[%c0_5, %c0_6] : memref<32x16xf32, #tpu.memory_space<vmem>>, vector<32x16xf32>
    tpu.vector_store %arg4[%c0_5, %c0_6], %5 {strides = array<i32>} : memref<32x16xf32, #tpu.memory_space<vmem>>, vector<32x16xf32>,
    return
  }
  func.func @transform_0(%arg0: i32) -> (i32, i32) {
    %c0_i32 = arith.constant 0 : i32
    %c0_i32_0 = arith.constant 0 : i32
    return %arg0, %c0_i32 : i32, i32
  }
  func.func @transform_1(%arg0: i32) -> (i32, i32) {
    %c0_i32 = arith.constant 0 : i32
    %c0_i32_0 = arith.constant 0 : i32
    %c0_i32_1 = arith.constant 0 : i32
    return %c0_i32, %c0_i32_0 : i32, i32
  }
  func.func @transform_2(%arg0: i32) -> (i32, i32) {
    %c0_i32 = arith.constant 0 : i32
    %c0_i32_0 = arith.constant 0 : i32
    %c0_i32_1 = arith.constant 0 : i32
    return %c0_i32, %c0_i32_0 : i32, i32
  }
  func.func @transform_3(%arg0: i32) -> (i32, i32) {
    %c0_i32 = arith.constant 0 : i32
    %c0_i32_0 = arith.constant 0 : i32
    return %arg0, %c0_i32 : i32, i32
  }
}

module attributes {stable_mosaic.version = 11 : i64} {
  func.func @_matmul_bias_act_kernel(%arg0: i32, %arg1: memref<128x16xbf16, #tpu.memory_space<vmem>>, %arg2: memref<16x16xbf16, #tpu.memory_space<vmem>>, %arg3: memref<1x16xf32, #tpu.memory_space<vmem>>, %arg4: memref<128x16xf32, #tpu.memory_space<vmem>>) attributes {dimension_semantics = [#tpu.dimension_semantics<parallel>], iteration_bounds = array<i64: 1>, scalar_prefetch = 0 : i64, scratch_operands = 0 : i64, tpu.core_type = #tpu.core_type<tc>, window_params = [{transform_indices = @transform_0, window_bounds = array<i64: 128, 16>}, {pipeline_mode = #tpu.pipeline_mode<synchronous>, transform_indices = @transform_1, window_bounds = array<i64: 16, 16>}, {pipeline_mode = #tpu.pipeline_mode<synchronous>, transform_indices = @transform_2, window_bounds = array<i64: 1, 16>}, {transform_indices = @transform_3, window_bounds = array<i64: 128, 16>}]} {
    %c0 = arith.constant 0 : index
    %c0_0 = arith.constant 0 : index
    %0 = vector.load %arg1[%c0, %c0_0] : memref<128x16xbf16, #tpu.memory_space<vmem>>, vector<128x16xbf16>
    %c0_1 = arith.constant 0 : index
    %c0_2 = arith.constant 0 : index
    %1 = vector.load %arg2[%c0_1, %c0_2] : memref<16x16xbf16, #tpu.memory_space<vmem>>, vector<16x16xbf16>
    %cst = arith.constant dense<0.000000e+00> : vector<128x16xf32>
    %2 = tpu.matmul %0, %1, %cst {dimension_numbers = #tpu.dot_dimension_numbers<[1], [0], [0], [1], [0, 0, 1, 1], [], []>} : vector<128x16xbf16>, vector<16x16xbf16>, vector<128x16xf32> -> vector<128x16xf32>
    %c0_3 = arith.constant 0 : index
    %c0_4 = arith.constant 0 : index
    %3 = vector.load %arg3[%c0_3, %c0_4] : memref<1x16xf32, #tpu.memory_space<vmem>>, vector<1x16xf32>
    %4 = vector.broadcast %3 : vector<1x16xf32> to vector<128x16xf32>
    %5 = arith.addf %2, %4 : vector<128x16xf32>
    %c0_5 = arith.constant 0 : index
    %c0_6 = arith.constant 0 : index
    %6 = vector.load %arg4[%c0_5, %c0_6] : memref<128x16xf32, #tpu.memory_space<vmem>>, vector<128x16xf32>
    tpu.vector_store %arg4[%c0_5, %c0_6], %5 {strides = array<i32>} : memref<128x16xf32, #tpu.memory_space<vmem>>, vector<128x16xf32>,
    return
  }
  func.func @transform_0(%arg0: i32) -> (i32, i32) {
    %c0_i32 = arith.constant 0 : i32
    %c0_i32_0 = arith.constant 0 : i32
    return %arg0, %c0_i32 : i32, i32
  }
  func.func @transform_1(%arg0: i32) -> (i32, i32) {
    %c0_i32 = arith.constant 0 : i32
    %c0_i32_0 = arith.constant 0 : i32
    %c0_i32_1 = arith.constant 0 : i32
    return %c0_i32, %c0_i32_0 : i32, i32
  }
  func.func @transform_2(%arg0: i32) -> (i32, i32) {
    %c0_i32 = arith.constant 0 : i32
    %c0_i32_0 = arith.constant 0 : i32
    %c0_i32_1 = arith.constant 0 : i32
    return %c0_i32, %c0_i32_0 : i32, i32
  }
  func.func @transform_3(%arg0: i32) -> (i32, i32) {
    %c0_i32 = arith.constant 0 : i32
    %c0_i32_0 = arith.constant 0 : i32
    return %arg0, %c0_i32 : i32, i32
  }
}

module attributes {stable_mosaic.version = 11 : i64} {
  func.func @_matmul_bias_act_kernel(%arg0: i32, %arg1: memref<128x8xbf16, #tpu.memory_space<vmem>>, %arg2: memref<8x16xbf16, #tpu.memory_space<vmem>>, %arg3: memref<1x16xf32, #tpu.memory_space<vmem>>, %arg4: memref<128x16xf32, #tpu.memory_space<vmem>>) attributes {dimension_semantics = [#tpu.dimension_semantics<parallel>], iteration_bounds = array<i64: 4>, scalar_prefetch = 0 : i64, scratch_operands = 0 : i64, tpu.core_type = #tpu.core_type<tc>, window_params = [{transform_indices = @transform_0, window_bounds = array<i64: 128, 8>}, {pipeline_mode = #tpu.pipeline_mode<synchronous>, transform_indices = @transform_1, window_bounds = array<i64: 8, 16>}, {pipeline_mode = #tpu.pipeline_mode<synchronous>, transform_indices = @transform_2, window_bounds = array<i64: 1, 16>}, {transform_indices = @transform_3, window_bounds = array<i64: 128, 16>}]} {
    %c0 = arith.constant 0 : index
    %c0_0 = arith.constant 0 : index
    %0 = vector.load %arg1[%c0, %c0_0] : memref<128x8xbf16, #tpu.memory_space<vmem>>, vector<128x8xbf16>
    %c0_1 = arith.constant 0 : index
    %c0_2 = arith.constant 0 : index
    %1 = vector.load %arg2[%c0_1, %c0_2] : memref<8x16xbf16, #tpu.memory_space<vmem>>, vector<8x16xbf16>
    %cst = arith.constant dense<0.000000e+00> : vector<128x16xf32>
    %2 = tpu.matmul %0, %1, %cst {dimension_numbers = #tpu.dot_dimension_numbers<[1], [0], [0], [1], [0, 0, 1, 1], [], []>} : vector<128x8xbf16>, vector<8x16xbf16>, vector<128x16xf32> -> vector<128x16xf32>
    %c0_3 = arith.constant 0 : index
    %c0_4 = arith.constant 0 : index
    %3 = vector.load %arg3[%c0_3, %c0_4] : memref<1x16xf32, #tpu.memory_space<vmem>>, vector<1x16xf32>
    %4 = vector.broadcast %3 : vector<1x16xf32> to vector<128x16xf32>
    %5 = arith.addf %2, %4 : vector<128x16xf32>
    %c0_5 = arith.constant 0 : index
    %c0_6 = arith.constant 0 : index
    %6 = vector.load %arg4[%c0_5, %c0_6] : memref<128x16xf32, #tpu.memory_space<vmem>>, vector<128x16xf32>
    tpu.vector_store %arg4[%c0_5, %c0_6], %5 {strides = array<i32>} : memref<128x16xf32, #tpu.memory_space<vmem>>, vector<128x16xf32>,
    return
  }
  func.func @transform_0(%arg0: i32) -> (i32, i32) {
    %c0_i32 = arith.constant 0 : i32
    %c0_i32_0 = arith.constant 0 : i32
    return %arg0, %c0_i32 : i32, i32
  }
  func.func @transform_1(%arg0: i32) -> (i32, i32) {
    %c0_i32 = arith.constant 0 : i32
    %c0_i32_0 = arith.constant 0 : i32
    %c0_i32_1 = arith.constant 0 : i32
    return %c0_i32, %c0_i32_0 : i32, i32
  }
  func.func @transform_2(%arg0: i32) -> (i32, i32) {
    %c0_i32 = arith.constant 0 : i32
    %c0_i32_0 = arith.constant 0 : i32
    %c0_i32_1 = arith.constant 0 : i32
    return %c0_i32, %c0_i32_0 : i32, i32
  }
  func.func @transform_3(%arg0: i32) -> (i32, i32) {
    %c0_i32 = arith.constant 0 : i32
    %c0_i32_0 = arith.constant 0 : i32
    return %arg0, %c0_i32 : i32, i32
  }
}

module attributes {stable_mosaic.version = 11 : i64} {
  func.func @_matmul_bias_act_kernel(%arg0: i32, %arg1: memref<128x144xbf16, #tpu.memory_space<vmem>>, %arg2: memref<144x16xbf16, #tpu.memory_space<vmem>>, %arg3: memref<1x16xf32, #tpu.memory_space<vmem>>, %arg4: memref<128x16xf32, #tpu.memory_space<vmem>>) attributes {dimension_semantics = [#tpu.dimension_semantics<parallel>], iteration_bounds = array<i64: 6>, scalar_prefetch = 0 : i64, scratch_operands = 0 : i64, tpu.core_type = #tpu.core_type<tc>, window_params = [{transform_indices = @transform_0, window_bounds = array<i64: 128, 144>}, {pipeline_mode = #tpu.pipeline_mode<synchronous>, transform_indices = @transform_1, window_bounds = array<i64: 144, 16>}, {pipeline_mode = #tpu.pipeline_mode<synchronous>, transform_indices = @transform_2, window_bounds = array<i64: 1, 16>}, {transform_indices = @transform_3, window_bounds = array<i64: 128, 16>}]} {
    %c0 = arith.constant 0 : index
    %c0_0 = arith.constant 0 : index
    %0 = vector.load %arg1[%c0, %c0_0] : memref<128x144xbf16, #tpu.memory_space<vmem>>, vector<128x144xbf16>
    %c0_1 = arith.constant 0 : index
    %c0_2 = arith.constant 0 : index
    %1 = vector.load %arg2[%c0_1, %c0_2] : memref<144x16xbf16, #tpu.memory_space<vmem>>, vector<144x16xbf16>
    %cst = arith.constant dense<0.000000e+00> : vector<128x16xf32>
    %2 = tpu.matmul %0, %1, %cst {dimension_numbers = #tpu.dot_dimension_numbers<[1], [0], [0], [1], [0, 0, 1, 1], [], []>} : vector<128x144xbf16>, vector<144x16xbf16>, vector<128x16xf32> -> vector<128x16xf32>
    %c0_3 = arith.constant 0 : index
    %c0_4 = arith.constant 0 : index
    %3 = vector.load %arg3[%c0_3, %c0_4] : memref<1x16xf32, #tpu.memory_space<vmem>>, vector<1x16xf32>
    %4 = vector.broadcast %3 : vector<1x16xf32> to vector<128x16xf32>
    %5 = arith.addf %2, %4 : vector<128x16xf32>
    %cst_5 = arith.constant 0.000000e+00 : f32
    %6 = vector.broadcast %cst_5 : f32 to vector<128x16xf32>
    %7 = arith.maximumf %5, %6 : vector<128x16xf32>
    %c0_6 = arith.constant 0 : index
    %c0_7 = arith.constant 0 : index
    %8 = vector.load %arg4[%c0_6, %c0_7] : memref<128x16xf32, #tpu.memory_space<vmem>>, vector<128x16xf32>
    tpu.vector_store %arg4[%c0_6, %c0_7], %7 {strides = array<i32>} : memref<128x16xf32, #tpu.memory_space<vmem>>, vector<128x16xf32>,
    return
  }
  func.func @transform_0(%arg0: i32) -> (i32, i32) {
    %c0_i32 = arith.constant 0 : i32
    %c0_i32_0 = arith.constant 0 : i32
    return %arg0, %c0_i32 : i32, i32
  }
  func.func @transform_1(%arg0: i32) -> (i32, i32) {
    %c0_i32 = arith.constant 0 : i32
    %c0_i32_0 = arith.constant 0 : i32
    %c0_i32_1 = arith.constant 0 : i32
    return %c0_i32, %c0_i32_0 : i32, i32
  }
  func.func @transform_2(%arg0: i32) -> (i32, i32) {
    %c0_i32 = arith.constant 0 : i32
    %c0_i32_0 = arith.constant 0 : i32
    %c0_i32_1 = arith.constant 0 : i32
    return %c0_i32, %c0_i32_0 : i32, i32
  }
  func.func @transform_3(%arg0: i32) -> (i32, i32) {
    %c0_i32 = arith.constant 0 : i32
    %c0_i32_0 = arith.constant 0 : i32
    return %arg0, %c0_i32 : i32, i32
  }
}

module attributes {stable_mosaic.version = 11 : i64} {
  func.func @_matmul_bias_act_kernel(%arg0: i32, %arg1: memref<128x144xbf16, #tpu.memory_space<vmem>>, %arg2: memref<144x36xbf16, #tpu.memory_space<vmem>>, %arg3: memref<1x36xf32, #tpu.memory_space<vmem>>, %arg4: memref<128x36xf32, #tpu.memory_space<vmem>>) attributes {dimension_semantics = [#tpu.dimension_semantics<parallel>], iteration_bounds = array<i64: 6>, scalar_prefetch = 0 : i64, scratch_operands = 0 : i64, tpu.core_type = #tpu.core_type<tc>, window_params = [{transform_indices = @transform_0, window_bounds = array<i64: 128, 144>}, {pipeline_mode = #tpu.pipeline_mode<synchronous>, transform_indices = @transform_1, window_bounds = array<i64: 144, 36>}, {pipeline_mode = #tpu.pipeline_mode<synchronous>, transform_indices = @transform_2, window_bounds = array<i64: 1, 36>}, {transform_indices = @transform_3, window_bounds = array<i64: 128, 36>}]} {
    %c0 = arith.constant 0 : index
    %c0_0 = arith.constant 0 : index
    %0 = vector.load %arg1[%c0, %c0_0] : memref<128x144xbf16, #tpu.memory_space<vmem>>, vector<128x144xbf16>
    %c0_1 = arith.constant 0 : index
    %c0_2 = arith.constant 0 : index
    %1 = vector.load %arg2[%c0_1, %c0_2] : memref<144x36xbf16, #tpu.memory_space<vmem>>, vector<144x36xbf16>
    %cst = arith.constant dense<0.000000e+00> : vector<128x36xf32>
    %2 = tpu.matmul %0, %1, %cst {dimension_numbers = #tpu.dot_dimension_numbers<[1], [0], [0], [1], [0, 0, 1, 1], [], []>} : vector<128x144xbf16>, vector<144x36xbf16>, vector<128x36xf32> -> vector<128x36xf32>
    %c0_3 = arith.constant 0 : index
    %c0_4 = arith.constant 0 : index
    %3 = vector.load %arg3[%c0_3, %c0_4] : memref<1x36xf32, #tpu.memory_space<vmem>>, vector<1x36xf32>
    %4 = vector.broadcast %3 : vector<1x36xf32> to vector<128x36xf32>
    %5 = arith.addf %2, %4 : vector<128x36xf32>
    %c0_5 = arith.constant 0 : index
    %c0_6 = arith.constant 0 : index
    %6 = vector.load %arg4[%c0_5, %c0_6] : memref<128x36xf32, #tpu.memory_space<vmem>>, vector<128x36xf32>
    tpu.vector_store %arg4[%c0_5, %c0_6], %5 {strides = array<i32>} : memref<128x36xf32, #tpu.memory_space<vmem>>, vector<128x36xf32>,
    return
  }
  func.func @transform_0(%arg0: i32) -> (i32, i32) {
    %c0_i32 = arith.constant 0 : i32
    %c0_i32_0 = arith.constant 0 : i32
    return %arg0, %c0_i32 : i32, i32
  }
  func.func @transform_1(%arg0: i32) -> (i32, i32) {
    %c0_i32 = arith.constant 0 : i32
    %c0_i32_0 = arith.constant 0 : i32
    %c0_i32_1 = arith.constant 0 : i32
    return %c0_i32, %c0_i32_0 : i32, i32
  }
  func.func @transform_2(%arg0: i32) -> (i32, i32) {
    %c0_i32 = arith.constant 0 : i32
    %c0_i32_0 = arith.constant 0 : i32
    %c0_i32_1 = arith.constant 0 : i32
    return %c0_i32, %c0_i32_0 : i32, i32
  }
  func.func @transform_3(%arg0: i32) -> (i32, i32) {
    %c0_i32 = arith.constant 0 : i32
    %c0_i32_0 = arith.constant 0 : i32
    return %arg0, %c0_i32 : i32, i32
  }
}

</mosaic_0001>

<bundles_post_ra>
// kernel: gfl_forward.9
= control target key start
LH: loop header
LB: loop body
LE: loop exit
PB: predicated region body
PF: predicated region fallthrough
CT: control target
= control target key end

     0   :  { %s534_s12 = smov 0   ;;  %s627_s0 = inlined_call_operand.vmem [shape: bf16[512,27], index: 0, kind: input, shape index: {}]   ;;  %s628_s1 = inlined_call_operand.vmem [shape: bf16[27,8], index: 1, kind: input, shape index: {}]   ;;  %s629_s2 = inlined_call_operand.vmem [shape: f32[1,8], index: 2, kind: input, shape index: {}]   ;;  %s630_s3 = inlined_call_operand.vmem [shape: f32[512,8], index: 3, kind: output, shape index: {}]  }
   0x1 LB: > { %s420_s13 = sadd.s32 4294967295, %s511_s12   ;;  %p424_p0 = scmp.ge.s32.totalorder %s511_s12, 1  ;;  %s511_s12 = sphi %s534_s12, %s13_s12  }
   0x2   : > { %p138_p1 = scmp.lt.s32.totalorder %s511_s12, 5 }
   0x4   : > { %p139_p2 = pnand %p424_p0, %p138_p1 }
   0x5   : > { %s425_s18 = sshll.u32 (!%p139_p2), %s420_s13, 4 }
   0x6   : > { %142 = sbr.rel (%p139_p2) target bundleno = 187 (0xbb), region = 32  ;;  %p163_p3 = scmp.lt.s32.totalorder (!%p139_p2), %s425_s18, 63 }
   0xb   : > { %v467_v0 = vld [vmem:[%s628_s1 + $0x8] sm:$0xf]  ;;  %v488_v1 = vld [vmem:[%s628_s1 + $0x8] sm:$0x30]  ;;  %vm275_vm0 = vcmask 1044480   ;;  %vm276_vm1 = vcmask 1045504  }
   0xc   : > { %v468_v2 = vor.u32 %v488_v1, %v467_v0  ;;  %v513_v3 = vmov 65535   ;;  %s632_s18 = smov (!%p163_p3, %s425_s18), 63  ;;  %v487_v7 = vld [vmem:[%s628_s1] sm:$0xff]  ;;  %vm250_vm2 = vcmask 220160   ;;  %vm347_vm3 = vcmask 64512  }
   0xd   : > { %v277_v4 = vsel %vm275_vm0, 4294967295, %v513_v3  ;;  %s426_s21 = sshll.u32 %s632_s18, 2  ;;  %v568_v16 = vld [vmem:[%s629_s2] ss:$0 sm:$0xff]  ;;  %s428_s27 = sshll.u32 %s632_s18, 3 }
   0xe   : > { %v278_v5 = vsel %vm276_vm1, %v277_v4, 0  ;;  %s166_s24 = scalar_lea.vmem %s627_s0, %s426_s21  ;;  %s576_s30 = scalar_lea.vmem %s630_s3, %s428_s27 }
   0xf   : > { %v280_v6 = vand.u32 %v468_v2, %v278_v5  ;;  %v479_v8 = vld [vmem:[%s166_s24] sm:$0xff]  ;;  %v481_v9 = vld [vmem:[%s166_s24 + $0x10] sm:$0xff]  ;;  %v480_v12 = vld [vmem:[%s166_s24 + $0x8] sm:$0xff] }
  0x10   : > { %v483_v10 = vld [vmem:[%s166_s24 + $0x20] sm:$0xff]  ;;  %v485_v11 = vld [vmem:[%s166_s24 + $0x30] sm:$0xff]  ;;  %v482_v13 = vld [vmem:[%s166_s24 + $0x18] sm:$0xff] }
  0x11   : > { %288 = vmatpush.bf16.msra.mxu0 %v280_v6  ;;  %489 = vmatpush.bf16.msra.mxu1 %v280_v6  ;;  %v484_v14 = vld [vmem:[%s166_s24 + $0x28] sm:$0xff]  ;;  %v486_v15 = vld [vmem:[%s166_s24 + $0x38] sm:$0xff] }
  0x12   : > { %490 = vmatpush.bf16.msra.mxu2 %v280_v6  ;;  %491 = vmatpush.bf16.msra.mxu3 %v280_v6 }
  0x15   : > { %289 = vmatpush.bf16.msra.mxu0 %v487_v7  ;;  %492 = vmatpush.bf16.msra.mxu1 %v487_v7 }
  0x16   : > { %493 = vmatpush.bf16.msra.mxu2 %v487_v7  ;;  %494 = vmatpush.bf16.msra.mxu3 %v487_v7 }
  0x18   : > { %469 = vmatmul.msk.bf16.vlgmr.msra.gmra.mxu0 %vm250_vm2, %v479_v8  ;;  %471 = vmatmul.msk.bf16.vlgmr.msra.gmra.mxu1 %vm250_vm2, %v481_v9 }
  0x19   : > { %473 = vmatmul.msk.bf16.vlgmr.msra.gmra.mxu2 %vm250_vm2, %v483_v10  ;;  %475 = vmatmul.msk.bf16.vlgmr.msra.gmra.mxu3 %vm250_vm2, %v485_v11 }
  0x28   : > { %470 = vmatmul.msk.bf16.gmra.mxu0 %vm250_vm2, %v480_v12  ;;  %472 = vmatmul.msk.bf16.gmra.mxu1 %vm250_vm2, %v482_v13 }
  0x29   : > { %474 = vmatmul.msk.bf16.gmra.mxu2 %vm250_vm2, %v484_v14  ;;  %476 = vmatmul.msk.bf16.gmra.mxu3 %vm250_vm2, %v486_v15 }
  0x95   : > { %v291_v17 = vpop.f32.mrf.mxu0  ;;  %v301_v18 = vpop.f32.mrf.mxu1 }
  0x96   : > { %v292_v19 = vadd.f32 %v568_v16, %v291_v17  ;;  %v302_v20 = vadd.f32 %v568_v16, %v301_v18 }
  0x98   : > { %v331_v21 = vmax.f32 %v292_v19, 0.0  ;;  %v335_v22 = vmax.f32 %v302_v20, 0.0 }
  0x9a   : > { %348 = vst.msk [vmem:[%s576_s30] sm:$0xff] %vm347_vm3, %v331_v21 }
  0x9b   : > { %352 = vst.msk [vmem:[%s576_s30 + $0x20] sm:$0xff] %vm347_vm3, %v335_v22 }
  0x9c   : > { %v311_v23 = vpop.f32.mrf.mxu2  ;;  %v321_v24 = vpop.f32.mrf.mxu3 }
  0x9d   : > { %v312_v25 = vadd.f32 %v568_v16, %v311_v23  ;;  %v322_v26 = vadd.f32 %v568_v16, %v321_v24  ;;  %v293_v27 = vpop.f32.mrf.mxu0  ;;  %v303_v28 = vpop.f32.mrf.mxu1 }
  0x9e   : > { %v294_v29 = vadd.f32 %v568_v16, %v293_v27  ;;  %v304_v30 = vadd.f32 %v568_v16, %v303_v28 }
  0x9f   : > { %v339_v31 = vmax.f32 %v312_v25, 0.0  ;;  %v343_v32 = vmax.f32 %v322_v26, 0.0 }
  0xa0   : > { %v332_v33 = vmax.f32 %v294_v29, 0.0  ;;  %v336_v34 = vmax.f32 %v304_v30, 0.0 }
  0xa1   : > { %356 = vst.msk [vmem:[%s576_s30 + $0x40] sm:$0xff] %vm347_vm3, %v339_v31 }
  0xa2   : > { %360 = vst.msk [vmem:[%s576_s30 + $0x60] sm:$0xff] %vm347_vm3, %v343_v32 }
  0xa3   : > { %349 = vst.msk [vmem:[%s576_s30 + $0x8] sm:$0xff] %vm347_vm3, %v332_v33 }
  0xa4   : > { %353 = vst.msk [vmem:[%s576_s30 + $0x28] sm:$0xff] %vm347_vm3, %v336_v34  ;;  %v313_v35 = vpop.f32.mrf.mxu2  ;;  %v323_v36 = vpop.f32.mrf.mxu3 }
  0xa5   : > { %v314_v37 = vadd.f32 %v568_v16, %v313_v35  ;;  %v324_v38 = vadd.f32 %v568_v16, %v323_v36  ;;  %v296_v39 = vpop.f32.mrf.mxu0  ;;  %v306_v40 = vpop.f32.mrf.mxu1 }
  0xa6   : > { %v297_v41 = vadd.f32 %v568_v16, %v296_v39  ;;  %v307_v42 = vadd.f32 %v568_v16, %v306_v40 }
  0xa7   : > { %v340_v43 = vmax.f32 %v314_v37, 0.0  ;;  %v344_v44 = vmax.f32 %v324_v38, 0.0 }
  0xa8   : > { %v333_v45 = vmax.f32 %v297_v41, 0.0  ;;  %v337_v46 = vmax.f32 %v307_v42, 0.0 }
  0xa9   : > { %357 = vst.msk [vmem:[%s576_s30 + $0x48] sm:$0xff] %vm347_vm3, %v340_v43 }
  0xaa   : > { %361 = vst.msk [vmem:[%s576_s30 + $0x68] sm:$0xff] %vm347_vm3, %v344_v44 }
  0xab   : > { %350 = vst.msk [vmem:[%s576_s30 + $0x10] sm:$0xff] %vm347_vm3, %v333_v45 }
  0xac   : > { %354 = vst.msk [vmem:[%s576_s30 + $0x30] sm:$0xff] %vm347_vm3, %v337_v46  ;;  %v316_v47 = vpop.f32.mrf.mxu2  ;;  %v326_v48 = vpop.f32.mrf.mxu3 }
  0xad   : > { %v317_v49 = vadd.f32 %v568_v16, %v316_v47  ;;  %v327_v50 = vadd.f32 %v568_v16, %v326_v48  ;;  %v298_v51 = vpop.f32.mrf.mxu0  ;;  %v308_v52 = vpop.f32.mrf.mxu1 }
  0xae   : > { %v299_v53 = vadd.f32 %v568_v16, %v298_v51  ;;  %v309_v54 = vadd.f32 %v568_v16, %v308_v52 }
  0xaf   : > { %v341_v55 = vmax.f32 %v317_v49, 0.0  ;;  %v345_v56 = vmax.f32 %v327_v50, 0.0 }
  0xb0   : > { %v334_v57 = vmax.f32 %v299_v53, 0.0  ;;  %v338_v58 = vmax.f32 %v309_v54, 0.0 }
  0xb1   : > { %358 = vst.msk [vmem:[%s576_s30 + $0x50] sm:$0xff] %vm347_vm3, %v341_v55 }
  0xb2   : > { %362 = vst.msk [vmem:[%s576_s30 + $0x70] sm:$0xff] %vm347_vm3, %v345_v56 }
  0xb3   : > { %351 = vst.msk [vmem:[%s576_s30 + $0x18] sm:$0xff] %vm347_vm3, %v334_v57 }
  0xb4   : > { %355 = vst.msk [vmem:[%s576_s30 + $0x38] sm:$0xff] %vm347_vm3, %v338_v58  ;;  %v318_v59 = vpop.f32.mrf.mxu2  ;;  %v328_v60 = vpop.f32.mrf.mxu3 }
  0xb5   : > { %v319_v61 = vadd.f32 %v568_v16, %v318_v59  ;;  %v329_v62 = vadd.f32 %v568_v16, %v328_v60 }
  0xb7   : > { %v342_v63 = vmax.f32 %v319_v61, 0.0  ;;  %v346_v0 = vmax.f32 %v329_v62, 0.0 }
  0xb9   : > { %359 = vst.msk [vmem:[%s576_s30 + $0x58] sm:$0xff] %vm347_vm3, %v342_v63 }
  0xba   : > { %363 = vst.msk [vmem:[%s576_s30 + $0x78] sm:$0xff] %vm347_vm3, %v346_v0 }
  0xbb PF: > { %s13_s12 = sadd.s32 1, %s511_s12  }
  0xbc   : > { %p10_p4 = scmp.ge.s32.totalorder %s13_s12, 6  }
  0xbe   :  { %12 = sbr.rel (!%p10_p4) target bundleno = 1 (0x1), region = 62 }

// kernel: gfl_forward.10
= control target key start
LH: loop header
LB: loop body
LE: loop exit
PB: predicated region body
PF: predicated region fallthrough
CT: control target
= control target key end

     0   :  { %vm136_vm0 = vcmask 1043456   ;;  %vm111_vm1 = vcmask 588800   ;;  %vm205_vm2 = vcmask 130048   ;;  %s444_s1 = inlined_call_operand.vmem [shape: bf16[72,16], index: 1, kind: input, shape index: {}]   ;;  %s445_s2 = inlined_call_operand.vmem [shape: f32[1,16], index: 2, kind: input, shape index: {}]   ;;  %s446_s0 = inlined_call_operand.vmem [shape: bf16[128,72], index: 0, kind: input, shape index: {}]   ;;  %s447_s3 = inlined_call_operand.vmem [shape: f32[128,16], index: 3, kind: output, shape index: {}]  }
   0x1   :  { %v39_v0 = vld [vmem:[%s444_s1 + $0x20] sm:$0xf]  ;;  %v293_v4 = vld [vmem:[%s444_s1 + $0x18] sm:$0xff]  ;;  %v292_v5 = vld [vmem:[%s444_s1 + $0x10] sm:$0xff] }
   0x2   :  { %v101_v1 = vunpack.c.l.b16 %v39_v0  ;;  %v291_v6 = vld [vmem:[%s444_s1 + $0x8] sm:$0xff]  ;;  %v290_v7 = vld [vmem:[%s444_s1] sm:$0xff]  ;;  %v284_v9 = vld [vmem:[%s446_s0 + $0x10] sm:$0xff] }
   0x3   :  { %v282_v8 = vld [vmem:[%s446_s0] sm:$0xff]  ;;  %v288_v11 = vld [vmem:[%s446_s0 + $0x30] sm:$0xff]  ;;  %v283_v12 = vld [vmem:[%s446_s0 + $0x8] sm:$0xff] }
   0x4   :  { %v106_v2 = vpack.c.b16 %v101_v1, %v101_v1  ;;  %v286_v10 = vld [vmem:[%s446_s0 + $0x20] sm:$0xff]  ;;  %v285_v13 = vld [vmem:[%s446_s0 + $0x18] sm:$0xff]  ;;  %v287_v14 = vld [vmem:[%s446_s0 + $0x28] sm:$0xff] }
   0x5   :  { %v289_v15 = vld [vmem:[%s446_s0 + $0x38] sm:$0xff]  ;;  %v309_v16 = vld [vmem:[%s445_s2] ss:$0 sm:$0xff] }
   0x6   :  { %v138_v3 = vsel %vm136_vm0, %v106_v2, 0 }
   0x7   :  { %143 = vmatpush.bf16.msra.mxu0 %v138_v3  ;;  %294 = vmatpush.bf16.msra.mxu1 %v138_v3 }
   0x8   :  { %295 = vmatpush.bf16.msra.mxu2 %v138_v3  ;;  %296 = vmatpush.bf16.msra.mxu3 %v138_v3 }
   0xb   :  { %144 = vmatpush.bf16.msra.mxu0 %v293_v4  ;;  %297 = vmatpush.bf16.msra.mxu1 %v293_v4 }
   0xc   :  { %298 = vmatpush.bf16.msra.mxu2 %v293_v4  ;;  %299 = vmatpush.bf16.msra.mxu3 %v293_v4 }
   0xf   :  { %145 = vmatpush.bf16.msra.mxu0 %v292_v5  ;;  %300 = vmatpush.bf16.msra.mxu1 %v292_v5 }
  0x10   :  { %301 = vmatpush.bf16.msra.mxu2 %v292_v5  ;;  %302 = vmatpush.bf16.msra.mxu3 %v292_v5 }
  0x13   :  { %146 = vmatpush.bf16.msra.mxu0 %v291_v6  ;;  %303 = vmatpush.bf16.msra.mxu1 %v291_v6 }
  0x14   :  { %304 = vmatpush.bf16.msra.mxu2 %v291_v6  ;;  %305 = vmatpush.bf16.msra.mxu3 %v291_v6 }
  0x17   :  { %147 = vmatpush.bf16.msra.mxu0 %v290_v7  ;;  %306 = vmatpush.bf16.msra.mxu1 %v290_v7 }
  0x18   :  { %307 = vmatpush.bf16.msra.mxu2 %v290_v7  ;;  %308 = vmatpush.bf16.msra.mxu3 %v290_v7 }
  0x1a   :  { %274 = vmatmul.msk.bf16.vlgmr.msra.gmra.mxu0 %vm111_vm1, %v282_v8  ;;  %276 = vmatmul.msk.bf16.vlgmr.msra.gmra.mxu1 %vm111_vm1, %v284_v9 }
  0x1b   :  { %278 = vmatmul.msk.bf16.vlgmr.msra.gmra.mxu2 %vm111_vm1, %v286_v10  ;;  %280 = vmatmul.msk.bf16.vlgmr.msra.gmra.mxu3 %vm111_vm1, %v288_v11 }
  0x2a   :  { %275 = vmatmul.msk.bf16.gmra.mxu0 %vm111_vm1, %v283_v12  ;;  %277 = vmatmul.msk.bf16.gmra.mxu1 %vm111_vm1, %v285_v13 }
  0x2b   :  { %279 = vmatmul.msk.bf16.gmra.mxu2 %vm111_vm1, %v287_v14  ;;  %281 = vmatmul.msk.bf16.gmra.mxu3 %vm111_vm1, %v289_v15 }
  0x97   :  { %v149_v17 = vpop.f32.mrf.mxu0  ;;  %v159_v18 = vpop.f32.mrf.mxu1 }
  0x98   :  { %v150_v19 = vadd.f32 %v309_v16, %v149_v17  ;;  %v160_v20 = vadd.f32 %v309_v16, %v159_v18 }
  0x9a   :  { %v189_v21 = vmax.f32 %v150_v19, 0.0  ;;  %v193_v22 = vmax.f32 %v160_v20, 0.0 }
  0x9c   :  { %206 = vst.msk [vmem:[%s447_s3] sm:$0xff] %vm205_vm2, %v189_v21 }
  0x9d   :  { %210 = vst.msk [vmem:[%s447_s3 + $0x20] sm:$0xff] %vm205_vm2, %v193_v22 }
  0x9e   :  { %v169_v23 = vpop.f32.mrf.mxu2  ;;  %v179_v24 = vpop.f32.mrf.mxu3 }
  0x9f   :  { %v170_v25 = vadd.f32 %v309_v16, %v169_v23  ;;  %v180_v26 = vadd.f32 %v309_v16, %v179_v24  ;;  %v151_v27 = vpop.f32.mrf.mxu0  ;;  %v161_v28 = vpop.f32.mrf.mxu1 }
  0xa0   :  { %v152_v29 = vadd.f32 %v309_v16, %v151_v27  ;;  %v162_v30 = vadd.f32 %v309_v16, %v161_v28 }
  0xa1   :  { %v197_v31 = vmax.f32 %v170_v25, 0.0  ;;  %v201_v32 = vmax.f32 %v180_v26, 0.0 }
  0xa2   :  { %v190_v33 = vmax.f32 %v152_v29, 0.0  ;;  %v194_v34 = vmax.f32 %v162_v30, 0.0 }
  0xa3   :  { %214 = vst.msk [vmem:[%s447_s3 + $0x40] sm:$0xff] %vm205_vm2, %v197_v31 }
  0xa4   :  { %218 = vst.msk [vmem:[%s447_s3 + $0x60] sm:$0xff] %vm205_vm2, %v201_v32 }
  0xa5   :  { %207 = vst.msk [vmem:[%s447_s3 + $0x8] sm:$0xff] %vm205_vm2, %v190_v33 }
  0xa6   :  { %211 = vst.msk [vmem:[%s447_s3 + $0x28] sm:$0xff] %vm205_vm2, %v194_v34  ;;  %v171_v35 = vpop.f32.mrf.mxu2  ;;  %v181_v36 = vpop.f32.mrf.mxu3 }
  0xa7   :  { %v172_v37 = vadd.f32 %v309_v16, %v171_v35  ;;  %v182_v38 = vadd.f32 %v309_v16, %v181_v36  ;;  %v154_v39 = vpop.f32.mrf.mxu0  ;;  %v164_v40 = vpop.f32.mrf.mxu1 }
  0xa8   :  { %v155_v41 = vadd.f32 %v309_v16, %v154_v39  ;;  %v165_v42 = vadd.f32 %v309_v16, %v164_v40 }
  0xa9   :  { %v198_v43 = vmax.f32 %v172_v37, 0.0  ;;  %v202_v44 = vmax.f32 %v182_v38, 0.0 }
  0xaa   :  { %v191_v45 = vmax.f32 %v155_v41, 0.0  ;;  %v195_v46 = vmax.f32 %v165_v42, 0.0 }
  0xab   :  { %215 = vst.msk [vmem:[%s447_s3 + $0x48] sm:$0xff] %vm205_vm2, %v198_v43 }
  0xac   :  { %219 = vst.msk [vmem:[%s447_s3 + $0x68] sm:$0xff] %vm205_vm2, %v202_v44 }
  0xad   :  { %208 = vst.msk [vmem:[%s447_s3 + $0x10] sm:$0xff] %vm205_vm2, %v191_v45 }
  0xae   :  { %212 = vst.msk [vmem:[%s447_s3 + $0x30] sm:$0xff] %vm205_vm2, %v195_v46  ;;  %v174_v47 = vpop.f32.mrf.mxu2  ;;  %v184_v48 = vpop.f32.mrf.mxu3 }
  0xaf   :  { %v175_v49 = vadd.f32 %v309_v16, %v174_v47  ;;  %v185_v50 = vadd.f32 %v309_v16, %v184_v48  ;;  %v156_v51 = vpop.f32.mrf.mxu0  ;;  %v166_v52 = vpop.f32.mrf.mxu1 }
  0xb0   :  { %v157_v53 = vadd.f32 %v309_v16, %v156_v51  ;;  %v167_v54 = vadd.f32 %v309_v16, %v166_v52 }
  0xb1   :  { %v199_v55 = vmax.f32 %v175_v49, 0.0  ;;  %v203_v56 = vmax.f32 %v185_v50, 0.0 }
  0xb2   :  { %v192_v57 = vmax.f32 %v157_v53, 0.0  ;;  %v196_v58 = vmax.f32 %v167_v54, 0.0 }
  0xb3   :  { %216 = vst.msk [vmem:[%s447_s3 + $0x50] sm:$0xff] %vm205_vm2, %v199_v55 }
  0xb4   :  { %220 = vst.msk [vmem:[%s447_s3 + $0x70] sm:$0xff] %vm205_vm2, %v203_v56 }
  0xb5   :  { %209 = vst.msk [vmem:[%s447_s3 + $0x18] sm:$0xff] %vm205_vm2, %v192_v57 }
  0xb6   :  { %213 = vst.msk [vmem:[%s447_s3 + $0x38] sm:$0xff] %vm205_vm2, %v196_v58  ;;  %v176_v59 = vpop.f32.mrf.mxu2  ;;  %v186_v60 = vpop.f32.mrf.mxu3 }
  0xb7   :  { %v177_v61 = vadd.f32 %v309_v16, %v176_v59  ;;  %v187_v62 = vadd.f32 %v309_v16, %v186_v60 }
  0xb9   :  { %v200_v63 = vmax.f32 %v177_v61, 0.0  ;;  %v204_v0 = vmax.f32 %v187_v62, 0.0 }
  0xbb   :  { %217 = vst.msk [vmem:[%s447_s3 + $0x58] sm:$0xff] %vm205_vm2, %v200_v63 }
  0xbc   :  { %221 = vst.msk [vmem:[%s447_s3 + $0x78] sm:$0xff] %vm205_vm2, %v204_v0 }

// kernel: gfl_forward.11
= control target key start
LH: loop header
LB: loop body
LE: loop exit
PB: predicated region body
PF: predicated region fallthrough
CT: control target
= control target key end

     0   :  { %vm113_vm0 = vcmask 130048   ;;  %vm162_vm1 = vcmask 261120   ;;  %s339_s1 = inlined_call_operand.vmem [shape: bf16[144,32], index: 1, kind: input, shape index: {}]   ;;  %s340_s0 = inlined_call_operand.vmem [shape: bf16[32,144], index: 0, kind: input, shape index: {}]   ;;  %s341_s2 = inlined_call_operand.vmem [shape: f32[1,32], index: 2, kind: input, shape index: {}]   ;;  %s342_s3 = inlined_call_operand.vmem [shape: f32[32,32], index: 3, kind: output, shape index: {}]  }
   0x1   :  { %v236_v0 = vld [vmem:[%s339_s1 + $0x38] sm:$0xff]  ;;  %v237_v1 = vld [vmem:[%s339_s1 + $0x40] sm:$0xff]  ;;  %v235_v3 = vld [vmem:[%s339_s1 + $0x30] sm:$0xff] }
   0x2   :  { %v225_v2 = vld [vmem:[%s340_s0 + $0x4] sm:$0xf]  ;;  %120 = vmatpush.bf16.msra.mxu0 %v236_v0  ;;  %238 = vmatpush.bf16.msra.mxu2 %v236_v0  ;;  %v175_v4 = vld [vmem:[%s340_s0 + $0x8] sm:$0xf0]  ;;  %v232_v8 = vld [vmem:[%s339_s1 + $0x18] sm:$0xff] }
   0x3   :  { %146 = vmatpush.bf16.msra.mxu1 %v237_v1  ;;  %v178_v5 = vor.u32 %v225_v2, %v175_v4  ;;  %v234_v6 = vld [vmem:[%s339_s1 + $0x28] sm:$0xff]  ;;  %v233_v7 = vld [vmem:[%s339_s1 + $0x20] sm:$0xff]  ;;  %v227_v9 = vld [vmem:[%s340_s0 + $0x14] sm:$0xf] }
   0x4   :  { %v183_v10 = vld [vmem:[%s340_s0 + $0x18] sm:$0xf0]  ;;  %v231_v11 = vld [vmem:[%s339_s1 + $0x10] sm:$0xff]  ;;  %v230_v13 = vld [vmem:[%s339_s1 + $0x8] sm:$0xff] }
   0x5   :  { %v186_v12 = vor.u32 %v227_v9, %v183_v10  ;;  %v229_v14 = vld [vmem:[%s339_s1] sm:$0xff]  ;;  %v226_v16 = vld [vmem:[%s340_s0 + $0x4] sm:$0xf0]  ;;  %v181_v17 = vld [vmem:[%s340_s0 + $0x10] sm:$0xf] }
   0x6   :  { %121 = vmatpush.bf16.msra.mxu0 %v235_v3  ;;  %239 = vmatpush.bf16.msra.mxu2 %v235_v3  ;;  %v173_v15 = vld [vmem:[%s340_s0] sm:$0xf]  ;;  %v228_v18 = vld [vmem:[%s340_s0 + $0x14] sm:$0xf0] }
   0x7   :  { %223 = vmatmul.msk.bf16.vlgmr.msra.gmra.mxu1 %vm113_vm0, %v178_v5  ;;  %v174_v19 = vor.u32 %v226_v16, %v173_v15  ;;  %v182_v20 = vor.u32 %v228_v18, %v181_v17  ;;  %v246_v23 = vld [vmem:[%s341_s2] ss:$0 sm:$0xff] }
   0xa   :  { %122 = vmatpush.bf16.msra.mxu0 %v234_v6  ;;  %240 = vmatpush.bf16.msra.mxu2 %v234_v6 }
   0xe   :  { %123 = vmatpush.bf16.msra.mxu0 %v233_v7  ;;  %241 = vmatpush.bf16.msra.mxu2 %v233_v7 }
  0x12   :  { %124 = vmatpush.bf16.msra.mxu0 %v232_v8  ;;  %242 = vmatpush.bf16.msra.mxu2 %v232_v8 }
  0x16   :  { %125 = vmatpush.bf16.msra.mxu0 %v231_v11  ;;  %243 = vmatpush.bf16.msra.mxu2 %v231_v11 }
  0x17   :  { %224 = vmatmul.msk.bf16.gmra.mxu1 %vm113_vm0, %v186_v12 }
  0x1a   :  { %126 = vmatpush.bf16.msra.mxu0 %v230_v13  ;;  %244 = vmatpush.bf16.msra.mxu2 %v230_v13 }
  0x1e   :  { %127 = vmatpush.bf16.msra.mxu0 %v229_v14  ;;  %245 = vmatpush.bf16.msra.mxu2 %v229_v14 }
  0x21   :  { %128 = vmatmul.bf16.vlgmr.msra.gmra.mxu0 %v174_v19  ;;  %133 = vmatmul.bf16.vlgmr.msra.gmra.mxu2 %v182_v20 }
  0x84   :  { %v148_v21 = vpop.f32.mrf.mxu1 }
  0x8c   :  { %v150_v22 = vpop.f32.mrf.mxu1 }
  0x94   :  { %v153_v28 = vpop.f32.mrf.mxu1 }
  0x9c   :  { %v155_v39 = vpop.f32.mrf.mxu1 }
  0x9e   :  { %v129_v24 = vpop.f32.mrf.mxu0 }
  0x9f   :  { %v130_v25 = vadd.f32 %v246_v23, %v129_v24 }
  0xa1   :  { %v149_v26 = vadd.f32 %v148_v21, %v130_v25 }
  0xa3   :  { %v158_v27 = vmax.f32 %v149_v26, 0.0 }
  0xa4   :  { %v134_v29 = vpop.f32.mrf.mxu2 }
  0xa5   :  { %163 = vst.msk [vmem:[%s342_s3] sm:$0xff] %vm162_vm1, %v158_v27  ;;  %v135_v30 = vadd.f32 %v246_v23, %v134_v29 }
  0xa6   :  { %v131_v31 = vpop.f32.mrf.mxu0 }
  0xa7   :  { %v154_v32 = vadd.f32 %v153_v28, %v135_v30  ;;  %v132_v33 = vadd.f32 %v246_v23, %v131_v31 }
  0xa9   :  { %v160_v34 = vmax.f32 %v154_v32, 0.0  ;;  %v151_v35 = vadd.f32 %v150_v22, %v132_v33 }
  0xab   :  { %165 = vst.msk [vmem:[%s342_s3 + $0x10] sm:$0xff] %vm162_vm1, %v160_v34  ;;  %v159_v36 = vmax.f32 %v151_v35, 0.0 }
  0xac   :  { %v136_v37 = vpop.f32.mrf.mxu2 }
  0xad   :  { %164 = vst.msk [vmem:[%s342_s3 + $0x8] sm:$0xff] %vm162_vm1, %v159_v36  ;;  %v137_v38 = vadd.f32 %v246_v23, %v136_v37 }
  0xaf   :  { %v156_v40 = vadd.f32 %v155_v39, %v137_v38 }
  0xb1   :  { %v161_v41 = vmax.f32 %v156_v40, 0.0 }
  0xb3   :  { %166 = vst.msk [vmem:[%s342_s3 + $0x18] sm:$0xff] %vm162_vm1, %v161_v41 }

// kernel: gfl_forward.12
= control target key start
LH: loop header
LB: loop body
LE: loop exit
PB: predicated region body
PF: predicated region fallthrough
CT: control target
= control target key end

     0   :  { %vm49_vm0 = vcmask 261120   ;;  %vm75_vm1 = vcmask 130048   ;;  %s156_s1 = inlined_call_operand.vmem [shape: bf16[32,16], index: 1, kind: input, shape index: {}]   ;;  %s157_s2 = inlined_call_operand.vmem [shape: f32[1,16], index: 2, kind: input, shape index: {}]   ;;  %s158_s0 = inlined_call_operand.vmem [shape: bf16[32,32], index: 0, kind: input, shape index: {}]   ;;  %s159_s3 = inlined_call_operand.vmem [shape: f32[32,16], index: 3, kind: output, shape index: {}]  }
   0x1   :  { %v105_v0 = vld [vmem:[%s156_s1 + $0x8] sm:$0xff]  ;;  %v104_v1 = vld [vmem:[%s156_s1] sm:$0xff] }
   0x2   :  { %62 = vmatpush.bf16.msra.mxu0 %v105_v0  ;;  %106 = vmatpush.bf16.msra.mxu1 %v105_v0  ;;  %v102_v2 = vld [vmem:[%s158_s0] sm:$0xff]  ;;  %v103_v3 = vld [vmem:[%s158_s0 + $0x8] sm:$0xff] }
   0x3   :  { %v108_v4 = vld [vmem:[%s157_s2] ss:$0 sm:$0xff] }
   0x6   :  { %63 = vmatpush.bf16.msra.mxu0 %v104_v1  ;;  %107 = vmatpush.bf16.msra.mxu1 %v104_v1 }
   0x9   :  { %100 = vmatmul.msk.bf16.vlgmr.msra.gmra.mxu0 %vm49_vm0, %v102_v2  ;;  %101 = vmatmul.msk.bf16.vlgmr.msra.gmra.mxu1 %vm49_vm0, %v103_v3 }
  0x86   :  { %v65_v5 = vpop.f32.mrf.mxu0  ;;  %v70_v6 = vpop.f32.mrf.mxu1 }
  0x87   :  { %v66_v7 = vadd.f32 %v108_v4, %v65_v5  ;;  %v71_v8 = vadd.f32 %v108_v4, %v70_v6 }
  0x89   :  { %76 = vst.msk [vmem:[%s159_s3] sm:$0xff] %vm75_vm1, %v66_v7 }
  0x8a   :  { %78 = vst.msk [vmem:[%s159_s3 + $0x10] sm:$0xff] %vm75_vm1, %v71_v8 }
  0x8e   :  { %v67_v9 = vpop.f32.mrf.mxu0  ;;  %v72_v10 = vpop.f32.mrf.mxu1 }
  0x8f   :  { %v68_v11 = vadd.f32 %v108_v4, %v67_v9  ;;  %v73_v12 = vadd.f32 %v108_v4, %v72_v10 }
  0x91   :  { %77 = vst.msk [vmem:[%s159_s3 + $0x8] sm:$0xff] %vm75_vm1, %v68_v11 }
  0x92   :  { %79 = vst.msk [vmem:[%s159_s3 + $0x18] sm:$0xff] %vm75_vm1, %v73_v12 }

// kernel: gfl_forward.13
= control target key start
LH: loop header
LB: loop body
LE: loop exit
PB: predicated region body
PF: predicated region fallthrough
CT: control target
= control target key end

     0   :  { %vm83_vm0 = vcmask 130048   ;;  %s356_s1 = inlined_call_operand.vmem [shape: bf16[16,16], index: 1, kind: input, shape index: {}]   ;;  %s357_s0 = inlined_call_operand.vmem [shape: bf16[128,16], index: 0, kind: input, shape index: {}]   ;;  %s358_s2 = inlined_call_operand.vmem [shape: f32[1,16], index: 2, kind: input, shape index: {}]   ;;  %s359_s3 = inlined_call_operand.vmem [shape: f32[128,16], index: 3, kind: output, shape index: {}]  }
   0x1   :  { %v229_v0 = vld [vmem:[%s356_s1] sm:$0xff]  ;;  %v223_v2 = vld [vmem:[%s357_s0 + $0x10] sm:$0xff]  ;;  %v222_v5 = vld [vmem:[%s357_s0 + $0x8] sm:$0xff] }
   0x2   :  { %v221_v1 = vld [vmem:[%s357_s0] sm:$0xff]  ;;  %115 = vmatpush.bf16.msra.mxu0 %v229_v0  ;;  %230 = vmatpush.bf16.msra.mxu1 %v229_v0  ;;  %v227_v4 = vld [vmem:[%s357_s0 + $0x30] sm:$0xff]  ;;  %v224_v6 = vld [vmem:[%s357_s0 + $0x18] sm:$0xff] }
   0x3   :  { %v225_v3 = vld [vmem:[%s357_s0 + $0x20] sm:$0xff]  ;;  %231 = vmatpush.bf16.msra.mxu2 %v229_v0  ;;  %232 = vmatpush.bf16.msra.mxu3 %v229_v0  ;;  %v226_v7 = vld [vmem:[%s357_s0 + $0x28] sm:$0xff]  ;;  %v228_v8 = vld [vmem:[%s357_s0 + $0x38] sm:$0xff] }
   0x4   :  { %v233_v9 = vld [vmem:[%s358_s2] ss:$0 sm:$0xff] }
   0x5   :  { %213 = vmatmul.msk.bf16.vlgmr.msra.gmra.mxu0 %vm83_vm0, %v221_v1  ;;  %215 = vmatmul.msk.bf16.vlgmr.msra.gmra.mxu1 %vm83_vm0, %v223_v2 }
   0x6   :  { %217 = vmatmul.msk.bf16.vlgmr.msra.gmra.mxu2 %vm83_vm0, %v225_v3  ;;  %219 = vmatmul.msk.bf16.vlgmr.msra.gmra.mxu3 %vm83_vm0, %v227_v4 }
  0x15   :  { %214 = vmatmul.msk.bf16.gmra.mxu0 %vm83_vm0, %v222_v5  ;;  %216 = vmatmul.msk.bf16.gmra.mxu1 %vm83_vm0, %v224_v6 }
  0x16   :  { %218 = vmatmul.msk.bf16.gmra.mxu2 %vm83_vm0, %v226_v7  ;;  %220 = vmatmul.msk.bf16.gmra.mxu3 %vm83_vm0, %v228_v8 }
  0x82   :  { %v117_v10 = vpop.f32.mrf.mxu0  ;;  %v127_v11 = vpop.f32.mrf.mxu1 }
  0x83   :  { %v118_v12 = vadd.f32 %v233_v9, %v117_v10  ;;  %v128_v13 = vadd.f32 %v233_v9, %v127_v11 }
  0x85   :  { %157 = vst.msk [vmem:[%s359_s3] sm:$0xff] %vm83_vm0, %v118_v12 }
  0x86   :  { %161 = vst.msk [vmem:[%s359_s3 + $0x20] sm:$0xff] %vm83_vm0, %v128_v13 }
  0x89   :  { %v137_v14 = vpop.f32.mrf.mxu2  ;;  %v147_v15 = vpop.f32.mrf.mxu3 }
  0x8a   :  { %v138_v16 = vadd.f32 %v233_v9, %v137_v14  ;;  %v148_v17 = vadd.f32 %v233_v9, %v147_v15  ;;  %v119_v18 = vpop.f32.mrf.mxu0  ;;  %v129_v19 = vpop.f32.mrf.mxu1 }
  0x8b   :  { %v120_v20 = vadd.f32 %v233_v9, %v119_v18  ;;  %v130_v21 = vadd.f32 %v233_v9, %v129_v19 }
  0x8c   :  { %165 = vst.msk [vmem:[%s359_s3 + $0x40] sm:$0xff] %vm83_vm0, %v138_v16 }
  0x8d   :  { %169 = vst.msk [vmem:[%s359_s3 + $0x60] sm:$0xff] %vm83_vm0, %v148_v17 }
  0x8e   :  { %158 = vst.msk [vmem:[%s359_s3 + $0x8] sm:$0xff] %vm83_vm0, %v120_v20 }
  0x8f   :  { %162 = vst.msk [vmem:[%s359_s3 + $0x28] sm:$0xff] %vm83_vm0, %v130_v21 }
  0x91   :  { %v139_v22 = vpop.f32.mrf.mxu2  ;;  %v149_v23 = vpop.f32.mrf.mxu3 }
  0x92   :  { %v140_v24 = vadd.f32 %v233_v9, %v139_v22  ;;  %v150_v25 = vadd.f32 %v233_v9, %v149_v23  ;;  %v122_v26 = vpop.f32.mrf.mxu0  ;;  %v132_v27 = vpop.f32.mrf.mxu1 }
  0x93   :  { %v123_v28 = vadd.f32 %v233_v9, %v122_v26  ;;  %v133_v29 = vadd.f32 %v233_v9, %v132_v27 }
  0x94   :  { %166 = vst.msk [vmem:[%s359_s3 + $0x48] sm:$0xff] %vm83_vm0, %v140_v24 }
  0x95   :  { %170 = vst.msk [vmem:[%s359_s3 + $0x68] sm:$0xff] %vm83_vm0, %v150_v25 }
  0x96   :  { %159 = vst.msk [vmem:[%s359_s3 + $0x10] sm:$0xff] %vm83_vm0, %v123_v28 }
  0x97   :  { %163 = vst.msk [vmem:[%s359_s3 + $0x30] sm:$0xff] %vm83_vm0, %v133_v29 }
  0x99   :  { %v142_v30 = vpop.f32.mrf.mxu2  ;;  %v152_v31 = vpop.f32.mrf.mxu3 }
  0x9a   :  { %v143_v32 = vadd.f32 %v233_v9, %v142_v30  ;;  %v153_v33 = vadd.f32 %v233_v9, %v152_v31  ;;  %v124_v34 = vpop.f32.mrf.mxu0  ;;  %v134_v35 = vpop.f32.mrf.mxu1 }
  0x9b   :  { %v125_v36 = vadd.f32 %v233_v9, %v124_v34  ;;  %v135_v37 = vadd.f32 %v233_v9, %v134_v35 }
  0x9c   :  { %167 = vst.msk [vmem:[%s359_s3 + $0x50] sm:$0xff] %vm83_vm0, %v143_v32 }
  0x9d   :  { %171 = vst.msk [vmem:[%s359_s3 + $0x70] sm:$0xff] %vm83_vm0, %v153_v33 }
  0x9e   :  { %160 = vst.msk [vmem:[%s359_s3 + $0x18] sm:$0xff] %vm83_vm0, %v125_v36 }
  0x9f   :  { %164 = vst.msk [vmem:[%s359_s3 + $0x38] sm:$0xff] %vm83_vm0, %v135_v37 }
  0xa1   :  { %v144_v38 = vpop.f32.mrf.mxu2  ;;  %v154_v39 = vpop.f32.mrf.mxu3 }
  0xa2   :  { %v145_v40 = vadd.f32 %v233_v9, %v144_v38  ;;  %v155_v41 = vadd.f32 %v233_v9, %v154_v39 }
  0xa4   :  { %168 = vst.msk [vmem:[%s359_s3 + $0x58] sm:$0xff] %vm83_vm0, %v145_v40 }
  0xa5   :  { %172 = vst.msk [vmem:[%s359_s3 + $0x78] sm:$0xff] %vm83_vm0, %v155_v41 }

// kernel: gfl_forward.14
= control target key start
LH: loop header
LB: loop body
LE: loop exit
PB: predicated region body
PF: predicated region fallthrough
CT: control target
= control target key end

     0   :  { %s486_s12 = smov 0   ;;  %s551_s0 = inlined_call_operand.vmem [shape: bf16[512,8], index: 0, kind: input, shape index: {}]   ;;  %s552_s1 = inlined_call_operand.vmem [shape: bf16[8,16], index: 1, kind: input, shape index: {}]   ;;  %s553_s2 = inlined_call_operand.vmem [shape: f32[1,16], index: 2, kind: input, shape index: {}]   ;;  %s554_s3 = inlined_call_operand.vmem [shape: f32[512,16], index: 3, kind: output, shape index: {}]  }
   0x1 LB: > { %s387_s13 = sadd.s32 4294967295, %s464_s12   ;;  %p391_p0 = scmp.ge.s32.totalorder %s464_s12, 1  ;;  %s464_s12 = sphi %s486_s12, %s13_s12  }
   0x2   : > { %p138_p1 = scmp.lt.s32.totalorder %s464_s12, 5 }
   0x4   : > { %p139_p2 = pnand %p391_p0, %p138_p1 }
   0x5   : > { %s392_s16 = sshll.u32 (!%p139_p2), %s387_s13, 4 }
   0x6   : > { %142 = sbr.rel (%p139_p2) target bundleno = 177 (0xb1), region = 32  ;;  %p163_p3 = scmp.lt.s32.totalorder (!%p139_p2), %s392_s16, 63 }
   0xb   : > { %v191_v0 = vld [vmem:[%s552_s1] sm:$0xf]  ;;  %vm261_vm0 = vcmask 1043456   ;;  %s556_s16 = smov (!%p163_p3, %s392_s16), 63  ;;  %vm236_vm1 = vcmask 64512   ;;  %vm314_vm2 = vcmask 130048  }
   0xc   : > { %v263_v1 = vsel %vm261_vm0, %v191_v0, 0  ;;  %s393_s17 = sshll.u32 %s556_s16, 2  ;;  %s395_s21 = sshll.u32 %s556_s16, 3  ;;  %v457_v10 = vld [vmem:[%s553_s2] ss:$0 sm:$0xff] }
   0xd   : > { %272 = vmatpush.bf16.msra.mxu0 %v263_v1  ;;  %446 = vmatpush.bf16.msra.mxu1 %v263_v1  ;;  %s166_s20 = scalar_lea.vmem %s551_s0, %s393_s17  ;;  %s514_s26 = scalar_lea.vmem %s554_s3, %s395_s21 }
   0xe   : > { %447 = vmatpush.bf16.msra.mxu2 %v263_v1  ;;  %448 = vmatpush.bf16.msra.mxu3 %v263_v1  ;;  %v438_v2 = vld [vmem:[%s166_s20] sm:$0xff]  ;;  %v440_v3 = vld [vmem:[%s166_s20 + $0x10] sm:$0xff]  ;;  %v439_v6 = vld [vmem:[%s166_s20 + $0x8] sm:$0xff] }
   0xf   : > { %v442_v4 = vld [vmem:[%s166_s20 + $0x20] sm:$0xff]  ;;  %v444_v5 = vld [vmem:[%s166_s20 + $0x30] sm:$0xff]  ;;  %v441_v7 = vld [vmem:[%s166_s20 + $0x18] sm:$0xff] }
  0x10   : > { %428 = vmatmul.msk.bf16.vlgmr.msra.gmra.mxu0 %vm236_vm1, %v438_v2  ;;  %430 = vmatmul.msk.bf16.vlgmr.msra.gmra.mxu1 %vm236_vm1, %v440_v3  ;;  %v443_v8 = vld [vmem:[%s166_s20 + $0x28] sm:$0xff]  ;;  %v445_v9 = vld [vmem:[%s166_s20 + $0x38] sm:$0xff] }
  0x11   : > { %432 = vmatmul.msk.bf16.vlgmr.msra.gmra.mxu2 %vm236_vm1, %v442_v4  ;;  %434 = vmatmul.msk.bf16.vlgmr.msra.gmra.mxu3 %vm236_vm1, %v444_v5 }
  0x20   : > { %429 = vmatmul.msk.bf16.gmra.mxu0 %vm236_vm1, %v439_v6  ;;  %431 = vmatmul.msk.bf16.gmra.mxu1 %vm236_vm1, %v441_v7 }
  0x21   : > { %433 = vmatmul.msk.bf16.gmra.mxu2 %vm236_vm1, %v443_v8  ;;  %435 = vmatmul.msk.bf16.gmra.mxu3 %vm236_vm1, %v445_v9 }
  0x8d   : > { %v274_v11 = vpop.f32.mrf.mxu0  ;;  %v284_v12 = vpop.f32.mrf.mxu1 }
  0x8e   : > { %v275_v13 = vadd.f32 %v457_v10, %v274_v11  ;;  %v285_v14 = vadd.f32 %v457_v10, %v284_v12 }
  0x90   : > { %315 = vst.msk [vmem:[%s514_s26] sm:$0xff] %vm314_vm2, %v275_v13 }
  0x91   : > { %319 = vst.msk [vmem:[%s514_s26 + $0x20] sm:$0xff] %vm314_vm2, %v285_v14 }
  0x94   : > { %v294_v15 = vpop.f32.mrf.mxu2  ;;  %v304_v16 = vpop.f32.mrf.mxu3 }
  0x95   : > { %v295_v17 = vadd.f32 %v457_v10, %v294_v15  ;;  %v305_v18 = vadd.f32 %v457_v10, %v304_v16  ;;  %v276_v19 = vpop.f32.mrf.mxu0  ;;  %v286_v20 = vpop.f32.mrf.mxu1 }
  0x96   : > { %v277_v21 = vadd.f32 %v457_v10, %v276_v19  ;;  %v287_v22 = vadd.f32 %v457_v10, %v286_v20 }
  0x97   : > { %323 = vst.msk [vmem:[%s514_s26 + $0x40] sm:$0xff] %vm314_vm2, %v295_v17 }
  0x98   : > { %327 = vst.msk [vmem:[%s514_s26 + $0x60] sm:$0xff] %vm314_vm2, %v305_v18 }
  0x99   : > { %316 = vst.msk [vmem:[%s514_s26 + $0x8] sm:$0xff] %vm314_vm2, %v277_v21 }
  0x9a   : > { %320 = vst.msk [vmem:[%s514_s26 + $0x28] sm:$0xff] %vm314_vm2, %v287_v22 }
  0x9c   : > { %v296_v23 = vpop.f32.mrf.mxu2  ;;  %v306_v24 = vpop.f32.mrf.mxu3 }
  0x9d   : > { %v297_v25 = vadd.f32 %v457_v10, %v296_v23  ;;  %v307_v26 = vadd.f32 %v457_v10, %v306_v24  ;;  %v279_v27 = vpop.f32.mrf.mxu0  ;;  %v289_v28 = vpop.f32.mrf.mxu1 }
  0x9e   : > { %v280_v29 = vadd.f32 %v457_v10, %v279_v27  ;;  %v290_v30 = vadd.f32 %v457_v10, %v289_v28 }
  0x9f   : > { %324 = vst.msk [vmem:[%s514_s26 + $0x48] sm:$0xff] %vm314_vm2, %v297_v25 }
  0xa0   : > { %328 = vst.msk [vmem:[%s514_s26 + $0x68] sm:$0xff] %vm314_vm2, %v307_v26 }
  0xa1   : > { %317 = vst.msk [vmem:[%s514_s26 + $0x10] sm:$0xff] %vm314_vm2, %v280_v29 }
  0xa2   : > { %321 = vst.msk [vmem:[%s514_s26 + $0x30] sm:$0xff] %vm314_vm2, %v290_v30 }
  0xa4   : > { %v299_v31 = vpop.f32.mrf.mxu2  ;;  %v309_v32 = vpop.f32.mrf.mxu3 }
  0xa5   : > { %v300_v33 = vadd.f32 %v457_v10, %v299_v31  ;;  %v310_v34 = vadd.f32 %v457_v10, %v309_v32  ;;  %v281_v35 = vpop.f32.mrf.mxu0  ;;  %v291_v36 = vpop.f32.mrf.mxu1 }
  0xa6   : > { %v282_v37 = vadd.f32 %v457_v10, %v281_v35  ;;  %v292_v38 = vadd.f32 %v457_v10, %v291_v36 }
  0xa7   : > { %325 = vst.msk [vmem:[%s514_s26 + $0x50] sm:$0xff] %vm314_vm2, %v300_v33 }
  0xa8   : > { %329 = vst.msk [vmem:[%s514_s26 + $0x70] sm:$0xff] %vm314_vm2, %v310_v34 }
  0xa9   : > { %318 = vst.msk [vmem:[%s514_s26 + $0x18] sm:$0xff] %vm314_vm2, %v282_v37 }
  0xaa   : > { %322 = vst.msk [vmem:[%s514_s26 + $0x38] sm:$0xff] %vm314_vm2, %v292_v38 }
  0xac   : > { %v301_v39 = vpop.f32.mrf.mxu2  ;;  %v311_v40 = vpop.f32.mrf.mxu3 }
  0xad   : > { %v302_v41 = vadd.f32 %v457_v10, %v301_v39  ;;  %v312_v42 = vadd.f32 %v457_v10, %v311_v40 }
  0xaf   : > { %326 = vst.msk [vmem:[%s514_s26 + $0x58] sm:$0xff] %vm314_vm2, %v302_v41 }
  0xb0   : > { %330 = vst.msk [vmem:[%s514_s26 + $0x78] sm:$0xff] %vm314_vm2, %v312_v42 }
  0xb1 PF: > { %s13_s12 = sadd.s32 1, %s464_s12  }
  0xb2   : > { %p10_p4 = scmp.ge.s32.totalorder %s13_s12, 6  }
  0xb4   :  { %12 = sbr.rel (!%p10_p4) target bundleno = 1 (0x1), region = 62 }

// kernel: gfl_forward.15
= control target key start
LH: loop header
LB: loop body
LE: loop exit
PB: predicated region body
PF: predicated region fallthrough
CT: control target
= control target key end

     0   :  { %s745_s12 = smov 0   ;;  %s893_s0 = inlined_call_operand.vmem [shape: bf16[768,144], index: 0, kind: input, shape index: {}]   ;;  %s894_s1 = inlined_call_operand.vmem [shape: bf16[144,16], index: 1, kind: input, shape index: {}]   ;;  %s895_s2 = inlined_call_operand.vmem [shape: f32[1,16], index: 2, kind: input, shape index: {}]   ;;  %s896_s3 = inlined_call_operand.vmem [shape: f32[768,16], index: 3, kind: output, shape index: {}]  }
   0x1 LB: > { %s553_s13 = sadd.s32 4294967295, %s723_s12   ;;  %p557_p0 = scmp.ge.s32.totalorder %s723_s12, 1  ;;  %s723_s12 = sphi %s745_s12, %s13_s12  }
   0x2   : > { %p139_p1 = scmp.lt.s32.totalorder %s723_s12, 7 }
   0x4   : > { %p140_p2 = pnand %p557_p0, %p139_p1 }
   0x5   : > { %s558_s18 = sshll.u32 (!%p140_p2), %s553_s13, 4 }
   0x6   : > { %143 = sbr.rel (%p140_p2) target bundleno = 238 (0xee), region = 32  ;;  %p165_p3 = scmp.lt.s32.totalorder (!%p140_p2), %s558_s18, 95 }
   0xb   : > { %v697_v0 = vld [vmem:[%s894_s1 + $0x38] sm:$0xff]  ;;  %v698_v1 = vld [vmem:[%s894_s1 + $0x40] sm:$0xff]  ;;  %v696_v2 = vld [vmem:[%s894_s1 + $0x30] sm:$0xff]  ;;  %s898_s18 = smov (!%p165_p3, %s558_s18), 95  ;;  %vm342_vm0 = vcmask 130048  }
   0xc   : > { %367 = vmatpush.bf16.msra.mxu0 %v697_v0  ;;  %699 = vmatpush.bf16.msra.mxu2 %v697_v0  ;;  %s673_s21 = sshll.u32 %s898_s18, 3  ;;  %v695_v3 = vld [vmem:[%s894_s1 + $0x28] sm:$0xff]  ;;  %v694_v7 = vld [vmem:[%s894_s1 + $0x20] sm:$0xff]  ;;  %v693_v11 = vld [vmem:[%s894_s1 + $0x18] sm:$0xff] }
   0xd   : > { %423 = vmatpush.bf16.msra.mxu1 %v698_v1  ;;  %707 = vmatpush.bf16.msra.mxu3 %v698_v1  ;;  %s770_s24 = scalar_lea.vmem %s893_s0, %s673_s21  ;;  %v692_v12 = vld [vmem:[%s894_s1 + $0x10] sm:$0xff]  ;;  %v691_v16 = vld [vmem:[%s894_s1 + $0x8] sm:$0xff]  ;;  %v690_v19 = vld [vmem:[%s894_s1] sm:$0xff]  ;;  %s841_s15 = scalar_lea.vmem %s896_s3, %s673_s21 }
   0xe   : > { %v674_v4 = vld [vmem:[%s770_s24 + $0x4] sm:$0xf]  ;;  %v567_v5 = vld [vmem:[%s770_s24 + $0x8] sm:$0xf0]  ;;  %v684_v8 = vld [vmem:[%s770_s24 + $0x54] sm:$0xf] }
   0xf   : > { %v570_v6 = vor.u32 %v674_v4, %v567_v5  ;;  %v607_v9 = vld [vmem:[%s770_s24 + $0x58] sm:$0xf0]  ;;  %v676_v13 = vld [vmem:[%s770_s24 + $0x14] sm:$0xf]  ;;  %v686_v17 = vld [vmem:[%s770_s24 + $0x64] sm:$0xf] }
  0x10   : > { %368 = vmatpush.bf16.msra.mxu0 %v696_v2  ;;  %700 = vmatpush.bf16.msra.mxu2 %v696_v2  ;;  %v610_v10 = vor.u32 %v684_v8, %v607_v9  ;;  %v575_v14 = vld [vmem:[%s770_s24 + $0x18] sm:$0xf0]  ;;  %v615_v18 = vld [vmem:[%s770_s24 + $0x68] sm:$0xf0]  ;;  %v565_v20 = vld [vmem:[%s770_s24] sm:$0xf] }
  0x11   : > { %663 = vmatmul.msk.bf16.vlgmr.msra.gmra.mxu1 %vm342_vm0, %v570_v6  ;;  %v578_v15 = vor.u32 %v676_v13, %v575_v14  ;;  %v675_v21 = vld [vmem:[%s770_s24 + $0x4] sm:$0xf0]  ;;  %v618_v22 = vor.u32 %v686_v17, %v615_v18  ;;  %v597_v23 = vld [vmem:[%s770_s24 + $0x40] sm:$0xf]  ;;  %v678_v27 = vld [vmem:[%s770_s24 + $0x24] sm:$0xf] }
  0x12   : > { %668 = vmatmul.msk.bf16.vlgmr.msra.gmra.mxu3 %vm342_vm0, %v610_v10  ;;  %v683_v24 = vld [vmem:[%s770_s24 + $0x44] sm:$0xf0]  ;;  %v566_v25 = vor.u32 %v675_v21, %v565_v20  ;;  %v583_v28 = vld [vmem:[%s770_s24 + $0x28] sm:$0xf0]  ;;  %v688_v30 = vld [vmem:[%s770_s24 + $0x74] sm:$0xf] }
  0x13   : > { %v598_v26 = vor.u32 %v683_v24, %v597_v23  ;;  %v586_v29 = vor.u32 %v678_v27, %v583_v28  ;;  %v623_v31 = vld [vmem:[%s770_s24 + $0x78] sm:$0xf0]  ;;  %v573_v32 = vld [vmem:[%s770_s24 + $0x10] sm:$0xf]  ;;  %v677_v33 = vld [vmem:[%s770_s24 + $0x14] sm:$0xf0] }
  0x14   : > { %369 = vmatpush.bf16.msra.mxu0 %v695_v3  ;;  %701 = vmatpush.bf16.msra.mxu2 %v695_v3  ;;  %v626_v34 = vor.u32 %v688_v30, %v623_v31  ;;  %v605_v35 = vld [vmem:[%s770_s24 + $0x50] sm:$0xf]  ;;  %v685_v36 = vld [vmem:[%s770_s24 + $0x54] sm:$0xf0]  ;;  %v574_v37 = vor.u32 %v677_v33, %v573_v32  ;;  %v680_v39 = vld [vmem:[%s770_s24 + $0x34] sm:$0xf] }
  0x15   : > { %v606_v38 = vor.u32 %v685_v36, %v605_v35  ;;  %v591_v40 = vld [vmem:[%s770_s24 + $0x38] sm:$0xf0]  ;;  %v581_v42 = vld [vmem:[%s770_s24 + $0x20] sm:$0xf]  ;;  %v679_v43 = vld [vmem:[%s770_s24 + $0x24] sm:$0xf0] }
  0x16   : > { %v594_v41 = vor.u32 %v680_v39, %v591_v40  ;;  %v613_v44 = vld [vmem:[%s770_s24 + $0x60] sm:$0xf]  ;;  %v687_v45 = vld [vmem:[%s770_s24 + $0x64] sm:$0xf0]  ;;  %v582_v46 = vor.u32 %v679_v43, %v581_v42  ;;  %v682_v48 = vld [vmem:[%s770_s24 + $0x44] sm:$0xf] }
  0x17   : > { %v614_v47 = vor.u32 %v687_v45, %v613_v44  ;;  %v599_v49 = vld [vmem:[%s770_s24 + $0x48] sm:$0xf0]  ;;  %v589_v51 = vld [vmem:[%s770_s24 + $0x30] sm:$0xf]  ;;  %v681_v52 = vld [vmem:[%s770_s24 + $0x34] sm:$0xf0] }
  0x18   : > { %370 = vmatpush.bf16.msra.mxu0 %v694_v7  ;;  %702 = vmatpush.bf16.msra.mxu2 %v694_v7  ;;  %v602_v50 = vor.u32 %v682_v48, %v599_v49  ;;  %v621_v53 = vld [vmem:[%s770_s24 + $0x70] sm:$0xf]  ;;  %v689_v54 = vld [vmem:[%s770_s24 + $0x74] sm:$0xf0]  ;;  %v590_v55 = vor.u32 %v681_v52, %v589_v51  ;;  %v833_v60 = vld [vmem:[%s895_s2] ss:$0 sm:$0xff] }
  0x19   : > { %v622_v56 = vor.u32 %v689_v54, %v621_v53 }
  0x1c   : > { %371 = vmatpush.bf16.msra.mxu0 %v693_v11  ;;  %703 = vmatpush.bf16.msra.mxu2 %v693_v11 }
  0x20   : > { %372 = vmatpush.bf16.msra.mxu0 %v692_v12  ;;  %704 = vmatpush.bf16.msra.mxu2 %v692_v12 }
  0x21   : > { %664 = vmatmul.msk.bf16.gmra.mxu1 %vm342_vm0, %v578_v15 }
  0x22   : > { %669 = vmatmul.msk.bf16.gmra.mxu3 %vm342_vm0, %v618_v22 }
  0x24   : > { %373 = vmatpush.bf16.msra.mxu0 %v691_v16  ;;  %705 = vmatpush.bf16.msra.mxu2 %v691_v16 }
  0x28   : > { %374 = vmatpush.bf16.msra.mxu0 %v690_v19  ;;  %706 = vmatpush.bf16.msra.mxu2 %v690_v19 }
  0x2b   : > { %375 = vmatmul.bf16.vlgmr.msra.gmra.mxu0 %v566_v25  ;;  %395 = vmatmul.bf16.vlgmr.msra.gmra.mxu2 %v598_v26 }
  0x31   : > { %665 = vmatmul.msk.bf16.gmra.mxu1 %vm342_vm0, %v586_v29 }
  0x32   : > { %670 = vmatmul.msk.bf16.gmra.mxu3 %vm342_vm0, %v626_v34 }
  0x3b   : > { %380 = vmatmul.bf16.gmra.mxu0 %v574_v37  ;;  %400 = vmatmul.bf16.gmra.mxu2 %v606_v38 }
  0x41   : > { %666 = vmatmul.msk.bf16.gmra.mxu1 %vm342_vm0, %v594_v41 }
  0x4b   : > { %385 = vmatmul.bf16.gmra.mxu0 %v582_v46  ;;  %405 = vmatmul.bf16.gmra.mxu2 %v614_v47 }
  0x51   : > { %667 = vmatmul.msk.bf16.gmra.mxu1 %vm342_vm0, %v602_v50 }
  0x5b   : > { %390 = vmatmul.bf16.gmra.mxu0 %v590_v55  ;;  %410 = vmatmul.bf16.gmra.mxu2 %v622_v56 }
  0x8e   : > { %v425_v57 = vpop.f32.mrf.mxu1 }
  0x95   : > { %v450_v9 = vpop.f32.mrf.mxu3 }
  0x96   : > { %v427_v58 = vpop.f32.mrf.mxu1 }
  0x9d   : > { %v452_v20 = vpop.f32.mrf.mxu3 }
  0x9e   : > { %v430_v59 = vpop.f32.mrf.mxu1 }
  0xa5   : > { %v455_v32 = vpop.f32.mrf.mxu3 }
  0xa6   : > { %v432_v63 = vpop.f32.mrf.mxu1 }
  0xa8   : > { %v376_v61 = vpop.f32.mrf.mxu0 }
  0xa9   : > { %v377_v62 = vadd.f32 %v833_v60, %v376_v61 }
  0xab   : > { %v426_v0 = vadd.f32 %v425_v57, %v377_v62 }
  0xad   : > { %v465_v1 = vmax.f32 %v426_v0, 0.0  ;;  %v457_v47 = vpop.f32.mrf.mxu3 }
  0xae   : > { %v396_v2 = vpop.f32.mrf.mxu2  ;;  %v435_v5 = vpop.f32.mrf.mxu1 }
  0xaf   : > { %481 = vst.msk [vmem:[%s841_s15] sm:$0xff] %vm342_vm0, %v465_v1  ;;  %v397_v36 = vadd.f32 %v833_v60, %v396_v2 }
  0xb0   : > { %v378_v3 = vpop.f32.mrf.mxu0 }
  0xb1   : > { %v379_v4 = vadd.f32 %v833_v60, %v378_v3 }
  0xb3   : > { %v428_v6 = vadd.f32 %v427_v58, %v379_v4 }
  0xb5   : > { %v466_v7 = vmax.f32 %v428_v6, 0.0  ;;  %v460_v61 = vpop.f32.mrf.mxu3 }
  0xb6   : > { %v398_v8 = vpop.f32.mrf.mxu2  ;;  %v437_v12 = vpop.f32.mrf.mxu1 }
  0xb7   : > { %482 = vst.msk [vmem:[%s841_s15 + $0x8] sm:$0xff] %vm342_vm0, %v466_v7  ;;  %v399_v49 = vadd.f32 %v833_v60, %v398_v8 }
  0xb8   : > { %v381_v10 = vpop.f32.mrf.mxu0 }
  0xb9   : > { %v382_v11 = vadd.f32 %v833_v60, %v381_v10 }
  0xbb   : > { %v431_v13 = vadd.f32 %v430_v59, %v382_v11 }
  0xbd   : > { %v467_v14 = vmax.f32 %v431_v13, 0.0  ;;  %v462_v8 = vpop.f32.mrf.mxu3 }
  0xbe   : > { %v401_v15 = vpop.f32.mrf.mxu2  ;;  %v440_v19 = vpop.f32.mrf.mxu1 }
  0xbf   : > { %483 = vst.msk [vmem:[%s841_s15 + $0x10] sm:$0xff] %vm342_vm0, %v467_v14  ;;  %v402_v16 = vadd.f32 %v833_v60, %v401_v15 }
  0xc0   : > { %v383_v17 = vpop.f32.mrf.mxu0 }
  0xc1   : > { %v384_v18 = vadd.f32 %v833_v60, %v383_v17  ;;  %v451_v21 = vadd.f32 %v450_v9, %v402_v16 }
  0xc3   : > { %v433_v22 = vadd.f32 %v432_v63, %v384_v18  ;;  %v475_v23 = vmax.f32 %v451_v21, 0.0 }
  0xc5   : > { %v468_v24 = vmax.f32 %v433_v22, 0.0  ;;  %491 = vst.msk [vmem:[%s841_s15 + $0x50] sm:$0xff] %vm342_vm0, %v475_v23 }
  0xc6   : > { %v403_v25 = vpop.f32.mrf.mxu2  ;;  %v442_v29 = vpop.f32.mrf.mxu1 }
  0xc7   : > { %484 = vst.msk [vmem:[%s841_s15 + $0x18] sm:$0xff] %vm342_vm0, %v468_v24  ;;  %v404_v26 = vadd.f32 %v833_v60, %v403_v25 }
  0xc8   : > { %v386_v27 = vpop.f32.mrf.mxu0 }
  0xc9   : > { %v387_v28 = vadd.f32 %v833_v60, %v386_v27  ;;  %v453_v30 = vadd.f32 %v452_v20, %v404_v26 }
  0xcb   : > { %v436_v31 = vadd.f32 %v435_v5, %v387_v28  ;;  %v476_v33 = vmax.f32 %v453_v30, 0.0 }
  0xcd   : > { %v469_v34 = vmax.f32 %v436_v31, 0.0  ;;  %492 = vst.msk [vmem:[%s841_s15 + $0x58] sm:$0xff] %vm342_vm0, %v476_v33 }
  0xce   : > { %v406_v35 = vpop.f32.mrf.mxu2  ;;  %v445_v40 = vpop.f32.mrf.mxu1 }
  0xcf   : > { %485 = vst.msk [vmem:[%s841_s15 + $0x20] sm:$0xff] %vm342_vm0, %v469_v34  ;;  %v407_v37 = vadd.f32 %v833_v60, %v406_v35  ;;  %v446_v42 = vadd.f32 %v445_v40, %v397_v36 }
  0xd0   : > { %v388_v38 = vpop.f32.mrf.mxu0 }
  0xd1   : > { %v389_v39 = vadd.f32 %v833_v60, %v388_v38  ;;  %v456_v41 = vadd.f32 %v455_v32, %v407_v37  ;;  %v473_v45 = vmax.f32 %v446_v42, 0.0 }
  0xd3   : > { %v438_v43 = vadd.f32 %v437_v12, %v389_v39  ;;  %v477_v44 = vmax.f32 %v456_v41, 0.0  ;;  %489 = vst.msk [vmem:[%s841_s15 + $0x40] sm:$0xff] %vm342_vm0, %v473_v45 }
  0xd5   : > { %v470_v46 = vmax.f32 %v438_v43, 0.0  ;;  %493 = vst.msk [vmem:[%s841_s15 + $0x60] sm:$0xff] %vm342_vm0, %v477_v44 }
  0xd6   : > { %v408_v48 = vpop.f32.mrf.mxu2  ;;  %v447_v53 = vpop.f32.mrf.mxu1 }
  0xd7   : > { %486 = vst.msk [vmem:[%s841_s15 + $0x28] sm:$0xff] %vm342_vm0, %v470_v46  ;;  %v409_v50 = vadd.f32 %v833_v60, %v408_v48  ;;  %v448_v55 = vadd.f32 %v447_v53, %v399_v49 }
  0xd8   : > { %v391_v51 = vpop.f32.mrf.mxu0 }
  0xd9   : > { %v392_v52 = vadd.f32 %v833_v60, %v391_v51  ;;  %v458_v54 = vadd.f32 %v457_v47, %v409_v50  ;;  %v474_v58 = vmax.f32 %v448_v55, 0.0 }
  0xdb   : > { %v441_v56 = vadd.f32 %v440_v19, %v392_v52  ;;  %v478_v57 = vmax.f32 %v458_v54, 0.0  ;;  %490 = vst.msk [vmem:[%s841_s15 + $0x48] sm:$0xff] %vm342_vm0, %v474_v58 }
  0xdd   : > { %v471_v59 = vmax.f32 %v441_v56, 0.0  ;;  %494 = vst.msk [vmem:[%s841_s15 + $0x68] sm:$0xff] %vm342_vm0, %v478_v57 }
  0xde   : > { %v411_v62 = vpop.f32.mrf.mxu2 }
  0xdf   : > { %487 = vst.msk [vmem:[%s841_s15 + $0x30] sm:$0xff] %vm342_vm0, %v471_v59  ;;  %v412_v63 = vadd.f32 %v833_v60, %v411_v62 }
  0xe0   : > { %v393_v0 = vpop.f32.mrf.mxu0 }
  0xe1   : > { %v394_v1 = vadd.f32 %v833_v60, %v393_v0  ;;  %v461_v2 = vadd.f32 %v460_v61, %v412_v63 }
  0xe3   : > { %v443_v3 = vadd.f32 %v442_v29, %v394_v1  ;;  %v479_v4 = vmax.f32 %v461_v2, 0.0 }
  0xe5   : > { %v472_v5 = vmax.f32 %v443_v3, 0.0  ;;  %495 = vst.msk [vmem:[%s841_s15 + $0x70] sm:$0xff] %vm342_vm0, %v479_v4 }
  0xe6   : > { %v413_v6 = vpop.f32.mrf.mxu2 }
  0xe7   : > { %488 = vst.msk [vmem:[%s841_s15 + $0x38] sm:$0xff] %vm342_vm0, %v472_v5  ;;  %v414_v7 = vadd.f32 %v833_v60, %v413_v6 }
  0xe9   : > { %v463_v9 = vadd.f32 %v462_v8, %v414_v7 }
  0xeb   : > { %v480_v10 = vmax.f32 %v463_v9, 0.0 }
  0xed   : > { %496 = vst.msk [vmem:[%s841_s15 + $0x78] sm:$0xff] %vm342_vm0, %v480_v10 }
  0xee PF: > { %s13_s12 = sadd.s32 1, %s723_s12  }
  0xef   : > { %p10_p4 = scmp.ge.s32.totalorder %s13_s12, 8  }
  0xf1   :  { %12 = sbr.rel (!%p10_p4) target bundleno = 1 (0x1), region = 62 }

// kernel: gfl_forward.17
= control target key start
LH: loop header
LB: loop body
LE: loop exit
PB: predicated region body
PF: predicated region fallthrough
CT: control target
= control target key end

     0   :  { %s730_s12 = smov 0   ;;  %s878_s0 = inlined_call_operand.vmem [shape: bf16[768,144], index: 0, kind: input, shape index: {}]   ;;  %s879_s1 = inlined_call_operand.vmem [shape: bf16[144,36], index: 1, kind: input, shape index: {}]   ;;  %s880_s2 = inlined_call_operand.vmem [shape: f32[1,36], index: 2, kind: input, shape index: {}]   ;;  %s881_s3 = inlined_call_operand.vmem [shape: f32[768,36], index: 3, kind: output, shape index: {}]  }
   0x1 LB: > { %s538_s13 = sadd.s32 4294967295, %s708_s12   ;;  %p542_p0 = scmp.ge.s32.totalorder %s708_s12, 1  ;;  %s708_s12 = sphi %s730_s12, %s13_s12  }
   0x2   : > { %p139_p1 = scmp.lt.s32.totalorder %s708_s12, 7 }
   0x4   : > { %p140_p2 = pnand %p542_p0, %p139_p1 }
   0x5   : > { %s543_s18 = sshll.u32 (!%p140_p2), %s538_s13, 4 }
   0x6   : > { %143 = sbr.rel (%p140_p2) target bundleno = 236 (0xec), region = 32  ;;  %p165_p3 = scmp.lt.s32.totalorder (!%p140_p2), %s543_s18, 95 }
   0xb   : > { %v682_v0 = vld [vmem:[%s879_s1 + $0x38] sm:$0xff]  ;;  %v683_v1 = vld [vmem:[%s879_s1 + $0x40] sm:$0xff]  ;;  %v681_v2 = vld [vmem:[%s879_s1 + $0x30] sm:$0xff]  ;;  %s883_s18 = smov (!%p165_p3, %s543_s18), 95  ;;  %vm342_vm0 = vcmask 130048   ;;  %vm465_vm1 = vcmask 293888  }
   0xc   : > { %367 = vmatpush.bf16.msra.mxu0 %v682_v0  ;;  %684 = vmatpush.bf16.msra.mxu2 %v682_v0  ;;  %s658_s21 = sshll.u32 %s883_s18, 3  ;;  %v680_v3 = vld [vmem:[%s879_s1 + $0x28] sm:$0xff]  ;;  %v679_v7 = vld [vmem:[%s879_s1 + $0x20] sm:$0xff]  ;;  %v678_v11 = vld [vmem:[%s879_s1 + $0x18] sm:$0xff] }
   0xd   : > { %423 = vmatpush.bf16.msra.mxu1 %v683_v1  ;;  %692 = vmatpush.bf16.msra.mxu3 %v683_v1  ;;  %s755_s24 = scalar_lea.vmem %s878_s0, %s658_s21  ;;  %v677_v12 = vld [vmem:[%s879_s1 + $0x10] sm:$0xff]  ;;  %v676_v16 = vld [vmem:[%s879_s1 + $0x8] sm:$0xff]  ;;  %v675_v19 = vld [vmem:[%s879_s1] sm:$0xff]  ;;  %s826_s15 = scalar_lea.vmem %s881_s3, %s658_s21 }
   0xe   : > { %v659_v4 = vld [vmem:[%s755_s24 + $0x4] sm:$0xf]  ;;  %v552_v5 = vld [vmem:[%s755_s24 + $0x8] sm:$0xf0]  ;;  %v669_v8 = vld [vmem:[%s755_s24 + $0x54] sm:$0xf] }
   0xf   : > { %v555_v6 = vor.u32 %v659_v4, %v552_v5  ;;  %v592_v9 = vld [vmem:[%s755_s24 + $0x58] sm:$0xf0]  ;;  %v661_v13 = vld [vmem:[%s755_s24 + $0x14] sm:$0xf]  ;;  %v671_v17 = vld [vmem:[%s755_s24 + $0x64] sm:$0xf] }
  0x10   : > { %368 = vmatpush.bf16.msra.mxu0 %v681_v2  ;;  %685 = vmatpush.bf16.msra.mxu2 %v681_v2  ;;  %v595_v10 = vor.u32 %v669_v8, %v592_v9  ;;  %v560_v14 = vld [vmem:[%s755_s24 + $0x18] sm:$0xf0]  ;;  %v600_v18 = vld [vmem:[%s755_s24 + $0x68] sm:$0xf0]  ;;  %v550_v20 = vld [vmem:[%s755_s24] sm:$0xf] }
  0x11   : > { %648 = vmatmul.msk.bf16.vlgmr.msra.gmra.mxu1 %vm342_vm0, %v555_v6  ;;  %v563_v15 = vor.u32 %v661_v13, %v560_v14  ;;  %v660_v21 = vld [vmem:[%s755_s24 + $0x4] sm:$0xf0]  ;;  %v603_v22 = vor.u32 %v671_v17, %v600_v18  ;;  %v582_v23 = vld [vmem:[%s755_s24 + $0x40] sm:$0xf]  ;;  %v663_v27 = vld [vmem:[%s755_s24 + $0x24] sm:$0xf] }
  0x12   : > { %653 = vmatmul.msk.bf16.vlgmr.msra.gmra.mxu3 %vm342_vm0, %v595_v10  ;;  %v668_v24 = vld [vmem:[%s755_s24 + $0x44] sm:$0xf0]  ;;  %v551_v25 = vor.u32 %v660_v21, %v550_v20  ;;  %v568_v28 = vld [vmem:[%s755_s24 + $0x28] sm:$0xf0]  ;;  %v673_v30 = vld [vmem:[%s755_s24 + $0x74] sm:$0xf] }
  0x13   : > { %v583_v26 = vor.u32 %v668_v24, %v582_v23  ;;  %v571_v29 = vor.u32 %v663_v27, %v568_v28  ;;  %v608_v31 = vld [vmem:[%s755_s24 + $0x78] sm:$0xf0]  ;;  %v558_v32 = vld [vmem:[%s755_s24 + $0x10] sm:$0xf]  ;;  %v662_v33 = vld [vmem:[%s755_s24 + $0x14] sm:$0xf0] }
  0x14   : > { %369 = vmatpush.bf16.msra.mxu0 %v680_v3  ;;  %686 = vmatpush.bf16.msra.mxu2 %v680_v3  ;;  %v611_v34 = vor.u32 %v673_v30, %v608_v31  ;;  %v590_v35 = vld [vmem:[%s755_s24 + $0x50] sm:$0xf]  ;;  %v670_v36 = vld [vmem:[%s755_s24 + $0x54] sm:$0xf0]  ;;  %v559_v37 = vor.u32 %v662_v33, %v558_v32  ;;  %v665_v39 = vld [vmem:[%s755_s24 + $0x34] sm:$0xf] }
  0x15   : > { %v591_v38 = vor.u32 %v670_v36, %v590_v35  ;;  %v576_v40 = vld [vmem:[%s755_s24 + $0x38] sm:$0xf0]  ;;  %v566_v42 = vld [vmem:[%s755_s24 + $0x20] sm:$0xf]  ;;  %v664_v43 = vld [vmem:[%s755_s24 + $0x24] sm:$0xf0] }
  0x16   : > { %v579_v41 = vor.u32 %v665_v39, %v576_v40  ;;  %v598_v44 = vld [vmem:[%s755_s24 + $0x60] sm:$0xf]  ;;  %v672_v45 = vld [vmem:[%s755_s24 + $0x64] sm:$0xf0]  ;;  %v567_v46 = vor.u32 %v664_v43, %v566_v42  ;;  %v667_v48 = vld [vmem:[%s755_s24 + $0x44] sm:$0xf] }
  0x17   : > { %v599_v47 = vor.u32 %v672_v45, %v598_v44  ;;  %v584_v49 = vld [vmem:[%s755_s24 + $0x48] sm:$0xf0]  ;;  %v574_v51 = vld [vmem:[%s755_s24 + $0x30] sm:$0xf]  ;;  %v666_v52 = vld [vmem:[%s755_s24 + $0x34] sm:$0xf0] }
  0x18   : > { %370 = vmatpush.bf16.msra.mxu0 %v679_v7  ;;  %687 = vmatpush.bf16.msra.mxu2 %v679_v7  ;;  %v587_v50 = vor.u32 %v667_v48, %v584_v49  ;;  %v606_v53 = vld [vmem:[%s755_s24 + $0x70] sm:$0xf]  ;;  %v674_v54 = vld [vmem:[%s755_s24 + $0x74] sm:$0xf0]  ;;  %v575_v55 = vor.u32 %v666_v52, %v574_v51  ;;  %v818_v60 = vld [vmem:[%s880_s2] ss:$0 sm:$0xff] }
  0x19   : > { %v607_v56 = vor.u32 %v674_v54, %v606_v53 }
  0x1c   : > { %371 = vmatpush.bf16.msra.mxu0 %v678_v11  ;;  %688 = vmatpush.bf16.msra.mxu2 %v678_v11 }
  0x20   : > { %372 = vmatpush.bf16.msra.mxu0 %v677_v12  ;;  %689 = vmatpush.bf16.msra.mxu2 %v677_v12 }
  0x21   : > { %649 = vmatmul.msk.bf16.gmra.mxu1 %vm342_vm0, %v563_v15 }
  0x22   : > { %654 = vmatmul.msk.bf16.gmra.mxu3 %vm342_vm0, %v603_v22 }
  0x24   : > { %373 = vmatpush.bf16.msra.mxu0 %v676_v16  ;;  %690 = vmatpush.bf16.msra.mxu2 %v676_v16 }
  0x28   : > { %374 = vmatpush.bf16.msra.mxu0 %v675_v19  ;;  %691 = vmatpush.bf16.msra.mxu2 %v675_v19 }
  0x2b   : > { %375 = vmatmul.bf16.vlgmr.msra.gmra.mxu0 %v551_v25  ;;  %395 = vmatmul.bf16.vlgmr.msra.gmra.mxu2 %v583_v26 }
  0x31   : > { %650 = vmatmul.msk.bf16.gmra.mxu1 %vm342_vm0, %v571_v29 }
  0x32   : > { %655 = vmatmul.msk.bf16.gmra.mxu3 %vm342_vm0, %v611_v34 }
  0x3b   : > { %380 = vmatmul.bf16.gmra.mxu0 %v559_v37  ;;  %400 = vmatmul.bf16.gmra.mxu2 %v591_v38 }
  0x41   : > { %651 = vmatmul.msk.bf16.gmra.mxu1 %vm342_vm0, %v579_v41 }
  0x4b   : > { %385 = vmatmul.bf16.gmra.mxu0 %v567_v46  ;;  %405 = vmatmul.bf16.gmra.mxu2 %v599_v47 }
  0x51   : > { %652 = vmatmul.msk.bf16.gmra.mxu1 %vm342_vm0, %v587_v50 }
  0x5b   : > { %390 = vmatmul.bf16.gmra.mxu0 %v575_v55  ;;  %410 = vmatmul.bf16.gmra.mxu2 %v607_v56 }
  0x8e   : > { %v425_v57 = vpop.f32.mrf.mxu1 }
  0x95   : > { %v450_v7 = vpop.f32.mrf.mxu3 }
  0x96   : > { %v427_v58 = vpop.f32.mrf.mxu1 }
  0x9d   : > { %v452_v17 = vpop.f32.mrf.mxu3 }
  0x9e   : > { %v430_v59 = vpop.f32.mrf.mxu1 }
  0xa5   : > { %v455_v27 = vpop.f32.mrf.mxu3 }
  0xa6   : > { %v432_v63 = vpop.f32.mrf.mxu1 }
  0xa8   : > { %v376_v61 = vpop.f32.mrf.mxu0 }
  0xa9   : > { %v377_v62 = vadd.f32 %v818_v60, %v376_v61 }
  0xab   : > { %v426_v0 = vadd.f32 %v425_v57, %v377_v62 }
  0xad   : > { %466 = vst.msk [vmem:[%s826_s15] sm:$0xff] %vm465_vm1, %v426_v0  ;;  %v457_v37 = vpop.f32.mrf.mxu3 }
  0xae   : > { %v396_v1 = vpop.f32.mrf.mxu2  ;;  %v435_v4 = vpop.f32.mrf.mxu1 }
  0xaf   : > { %v397_v29 = vadd.f32 %v818_v60, %v396_v1 }
  0xb0   : > { %v378_v2 = vpop.f32.mrf.mxu0 }
  0xb1   : > { %v379_v3 = vadd.f32 %v818_v60, %v378_v2 }
  0xb3   : > { %v428_v5 = vadd.f32 %v427_v58, %v379_v3 }
  0xb5   : > { %467 = vst.msk [vmem:[%s826_s15 + $0x8] sm:$0xff] %vm465_vm1, %v428_v5  ;;  %v460_v47 = vpop.f32.mrf.mxu3 }
  0xb6   : > { %v398_v6 = vpop.f32.mrf.mxu2  ;;  %v437_v10 = vpop.f32.mrf.mxu1 }
  0xb7   : > { %v399_v39 = vadd.f32 %v818_v60, %v398_v6 }
  0xb8   : > { %v381_v8 = vpop.f32.mrf.mxu0 }
  0xb9   : > { %v382_v9 = vadd.f32 %v818_v60, %v381_v8 }
  0xbb   : > { %v431_v11 = vadd.f32 %v430_v59, %v382_v9 }
  0xbd   : > { %468 = vst.msk [vmem:[%s826_s15 + $0x10] sm:$0xff] %vm465_vm1, %v431_v11  ;;  %v462_v56 = vpop.f32.mrf.mxu3 }
  0xbe   : > { %v401_v12 = vpop.f32.mrf.mxu2  ;;  %v440_v16 = vpop.f32.mrf.mxu1 }
  0xbf   : > { %v402_v13 = vadd.f32 %v818_v60, %v401_v12 }
  0xc0   : > { %v383_v14 = vpop.f32.mrf.mxu0 }
  0xc1   : > { %v384_v15 = vadd.f32 %v818_v60, %v383_v14  ;;  %v451_v18 = vadd.f32 %v450_v7, %v402_v13 }
  0xc3   : > { %v433_v19 = vadd.f32 %v432_v63, %v384_v15  ;;  %476 = vst.msk [vmem:[%s826_s15 + $0x50] sm:$0xff] %vm465_vm1, %v451_v18 }
  0xc5   : > { %469 = vst.msk [vmem:[%s826_s15 + $0x18] sm:$0xff] %vm465_vm1, %v433_v19 }
  0xc6   : > { %v403_v20 = vpop.f32.mrf.mxu2  ;;  %v442_v24 = vpop.f32.mrf.mxu1 }
  0xc7   : > { %v404_v21 = vadd.f32 %v818_v60, %v403_v20 }
  0xc8   : > { %v386_v22 = vpop.f32.mrf.mxu0 }
  0xc9   : > { %v387_v23 = vadd.f32 %v818_v60, %v386_v22  ;;  %v453_v25 = vadd.f32 %v452_v17, %v404_v21 }
  0xcb   : > { %v436_v26 = vadd.f32 %v435_v4, %v387_v23  ;;  %477 = vst.msk [vmem:[%s826_s15 + $0x58] sm:$0xff] %vm465_vm1, %v453_v25 }
  0xcd   : > { %470 = vst.msk [vmem:[%s826_s15 + $0x20] sm:$0xff] %vm465_vm1, %v436_v26 }
  0xce   : > { %v406_v28 = vpop.f32.mrf.mxu2  ;;  %v445_v33 = vpop.f32.mrf.mxu1 }
  0xcf   : > { %v407_v30 = vadd.f32 %v818_v60, %v406_v28  ;;  %v446_v35 = vadd.f32 %v445_v33, %v397_v29 }
  0xd0   : > { %v388_v31 = vpop.f32.mrf.mxu0 }
  0xd1   : > { %v389_v32 = vadd.f32 %v818_v60, %v388_v31  ;;  %v456_v34 = vadd.f32 %v455_v27, %v407_v30  ;;  %474 = vst.msk [vmem:[%s826_s15 + $0x40] sm:$0xff] %vm465_vm1, %v446_v35 }
  0xd3   : > { %v438_v36 = vadd.f32 %v437_v10, %v389_v32  ;;  %478 = vst.msk [vmem:[%s826_s15 + $0x60] sm:$0xff] %vm465_vm1, %v456_v34 }
  0xd5   : > { %471 = vst.msk [vmem:[%s826_s15 + $0x28] sm:$0xff] %vm465_vm1, %v438_v36 }
  0xd6   : > { %v408_v38 = vpop.f32.mrf.mxu2  ;;  %v447_v43 = vpop.f32.mrf.mxu1 }
  0xd7   : > { %v409_v40 = vadd.f32 %v818_v60, %v408_v38  ;;  %v448_v45 = vadd.f32 %v447_v43, %v399_v39 }
  0xd8   : > { %v391_v41 = vpop.f32.mrf.mxu0 }
  0xd9   : > { %v392_v42 = vadd.f32 %v818_v60, %v391_v41  ;;  %v458_v44 = vadd.f32 %v457_v37, %v409_v40  ;;  %475 = vst.msk [vmem:[%s826_s15 + $0x48] sm:$0xff] %vm465_vm1, %v448_v45 }
  0xdb   : > { %v441_v46 = vadd.f32 %v440_v16, %v392_v42  ;;  %479 = vst.msk [vmem:[%s826_s15 + $0x68] sm:$0xff] %vm465_vm1, %v458_v44 }
  0xdd   : > { %472 = vst.msk [vmem:[%s826_s15 + $0x30] sm:$0xff] %vm465_vm1, %v441_v46 }
  0xde   : > { %v411_v48 = vpop.f32.mrf.mxu2 }
  0xdf   : > { %v412_v49 = vadd.f32 %v818_v60, %v411_v48 }
  0xe0   : > { %v393_v50 = vpop.f32.mrf.mxu0 }
  0xe1   : > { %v394_v51 = vadd.f32 %v818_v60, %v393_v50  ;;  %v461_v52 = vadd.f32 %v460_v47, %v412_v49 }
  0xe3   : > { %v443_v53 = vadd.f32 %v442_v24, %v394_v51  ;;  %480 = vst.msk [vmem:[%s826_s15 + $0x70] sm:$0xff] %vm465_vm1, %v461_v52 }
  0xe5   : > { %473 = vst.msk [vmem:[%s826_s15 + $0x38] sm:$0xff] %vm465_vm1, %v443_v53 }
  0xe6   : > { %v413_v54 = vpop.f32.mrf.mxu2 }
  0xe7   : > { %v414_v55 = vadd.f32 %v818_v60, %v413_v54 }
  0xe9   : > { %v463_v57 = vadd.f32 %v462_v56, %v414_v55 }
  0xeb   : > { %481 = vst.msk [vmem:[%s826_s15 + $0x78] sm:$0xff] %vm465_vm1, %v463_v57 }
  0xec PF: > { %s13_s12 = sadd.s32 1, %s708_s12  }
  0xed   : > { %p10_p4 = scmp.ge.s32.totalorder %s13_s12, 8  }
  0xef   :  { %12 = sbr.rel (!%p10_p4) target bundleno = 1 (0x1), region = 62 }

</bundles_post_ra>
